<compile_context>
chip_gen: v7x
topology: tpu7x:2x2x1
jax: 0.10.0
libtpu: 0.0.40
codegen_flags: <defaults>
</compile_context>

<pallas_src>
import functools

import jax
import jax.numpy as jnp
import numpy as np
from jax import lax
from jax.experimental import pallas as pl
from jax.experimental.pallas import tpu as pltpu


def _prop_kernel(*refs, prop_time, has_sparse, halo, tile_h, img_h):
    """One grid step = one batch x one H-tile (tile_h rows + `halo` rows each side)."""
    it = iter(refs)
    g_ref = next(it)                        # (9, TH, W) guided tile, auto-pipelined VMEM
    g_any = next(it) if halo else None      # (B, 9, Hp, W) guided in HBM (halo rows only)
    x_any = next(it)                        # (B, Hp, W)    x in HBM
    s_any = next(it) if has_sparse else None
    out_ref = next(it)                      # (TH, W)
    xbuf = next(it)                         # (THe, W) scratch, x dtype
    sbuf = next(it) if has_sparse else None
    ghal = next(it) if halo else None       # (9, 2*halo, W) scratch, guided dtype
    sems = next(it)                         # (8,) DMA semaphores

    TH = tile_h
    THe = TH + 2 * halo
    W = out_ref.shape[-1]

    b = pl.program_id(0)
    t = pl.program_id(1)
    nt = pl.num_programs(1)
    row0 = t * TH                           # first "main" row (padded global coords)

    # ------------------- manual DMA: x / sparse + halo rows -------------------
    cp_x_main = pltpu.make_async_copy(
        x_any.at[b, pl.ds(row0, TH), :], xbuf.at[pl.ds(halo, TH), :], sems.at[0])
    cp_x_main.start()
    if has_sparse:
        cp_s_main = pltpu.make_async_copy(
            s_any.at[b, pl.ds(row0, TH), :], sbuf.at[pl.ds(halo, TH), :], sems.at[1])
        cp_s_main.start()

    if halo:
        has_top = t > 0
        has_bot = t < nt - 1
        top0 = jnp.maximum(row0 - halo, 0)              # clamped (unused when guarded off)
        bot0 = jnp.minimum(row0 + TH, nt * TH - halo)

        cp_g_top = pltpu.make_async_copy(
            g_any.at[b, :, pl.ds(top0, halo), :], ghal.at[:, pl.ds(0, halo), :], sems.at[2])
        cp_g_bot = pltpu.make_async_copy(
            g_any.at[b, :, pl.ds(bot0, halo), :], ghal.at[:, pl.ds(halo, halo), :], sems.at[3])
        cp_x_top = pltpu.make_async_copy(
            x_any.at[b, pl.ds(top0, halo), :], xbuf.at[pl.ds(0, halo), :], sems.at[4])
        cp_x_bot = pltpu.make_async_copy(
            x_any.at[b, pl.ds(bot0, halo), :], xbuf.at[pl.ds(halo + TH, halo), :], sems.at[5])
        if has_sparse:
            cp_s_top = pltpu.make_async_copy(
                s_any.at[b, pl.ds(top0, halo), :], sbuf.at[pl.ds(0, halo), :], sems.at[6])
            cp_s_bot = pltpu.make_async_copy(
                s_any.at[b, pl.ds(bot0, halo), :], sbuf.at[pl.ds(halo + TH, halo), :], sems.at[7])

        @pl.when(has_top)
        def _():
            cp_g_top.start()
            cp_x_top.start()
            if has_sparse:
                cp_s_top.start()

        @pl.when(jnp.logical_not(has_top))
        def _():
            # Image top: this halo does not exist.  Zero-fill so all values stay
            # finite (the true border row's cross-border weights are folded to 0).
            ghal[:, 0:halo, :] = jnp.zeros((9, halo, W), ghal.dtype)
            xbuf[0:halo, :] = jnp.zeros((halo, W), xbuf.dtype)
            if has_sparse:
                sbuf[0:halo, :] = jnp.zeros((halo, W), sbuf.dtype)

        @pl.when(has_bot)
        def _():
            cp_g_bot.start()
            cp_x_bot.start()
            if has_sparse:
                cp_s_bot.start()

        @pl.when(jnp.logical_not(has_bot))
        def _():
            ghal[:, halo:2 * halo, :] = jnp.zeros((9, halo, W), ghal.dtype)
            xbuf[halo + TH:THe, :] = jnp.zeros((halo, W), xbuf.dtype)
            if has_sparse:
                sbuf[halo + TH:THe, :] = jnp.zeros((halo, W), sbuf.dtype)

    cp_x_main.wait()
    if has_sparse:
        cp_s_main.wait()
    if halo:
        @pl.when(has_top)
        def _():
            cp_g_top.wait()
            cp_x_top.wait()
            if has_sparse:
                cp_s_top.wait()

        @pl.when(has_bot)
        def _():
            cp_g_bot.wait()
            cp_x_bot.wait()
            if has_sparse:
                cp_s_bot.wait()

    # ------------------------------- compute ----------------------------------
    # Global row/col coordinates of the working buffer (for folding F.unfold's
    # zero padding into the weights at the *true* image borders only).
    grow = lax.broadcasted_iota(jnp.int32, (THe, W), 0) + (row0 - halo)
    col = lax.broadcasted_iota(jnp.int32, (THe, W), 1)
    row_ok = (grow > 0, None, grow < img_h - 1)      # tap row offset -1 / 0 / +1
    col_ok = (col > 0, None, col < W - 1)            # tap col offset -1 / 0 / +1

    # Softmax over the 9 affinity channels (channel index = kh*3 + kw, unfold order).
    if halo:
        g = jnp.concatenate(
            [ghal[:, 0:halo, :].astype(jnp.float32),
             g_ref[...].astype(jnp.float32),
             ghal[:, halo:2 * halo, :].astype(jnp.float32)], axis=1)
    else:
        g = g_ref[...].astype(jnp.float32)
    e = jnp.exp(g - jnp.max(g, axis=0, keepdims=True))
    s = jnp.sum(e, axis=0, keepdims=True)
    inv = pl.reciprocal(s, approx=True)              # EUP slot
    inv = inv * (2.0 - s * inv)                      # one Newton step -> ~f32 accurate
    k = e * inv

    x0 = xbuf[...].astype(jnp.float32)               # (THe, W)
    if has_sparse:
        mask = jnp.sign(sbuf[...].astype(jnp.float32))   # sparse_depth.sign()
        keep = 1.0 - mask
        x0m = mask * x0                              # per-step epilogue is just "+ x0m"

    # Fold the zero padding (true image borders) and, for the sparse path,
    # (1 - mask) into the weights ONCE, outside the propagation loop.
    km = []
    for kh in range(3):
        for kw in range(3):
            w9 = k[kh * 3 + kw]
            valid = row_ok[kh]
            if col_ok[kw] is not None:
                valid = col_ok[kw] if valid is None else jnp.logical_and(valid, col_ok[kw])
            if valid is not None:
                w9 = jnp.where(valid, w9, 0.0)
            if has_sparse:
                w9 = w9 * keep
            km.append(w9)

    def step(xc):
        # out[i, j] = sum_{dr,dc} x[i+dr, j+dc] * km[(dr+1)*3 + (dc+1)]
        rows = (pltpu.roll(xc, shift=1, axis=0),          # reads x[i-1, :]
                xc,
                pltpu.roll(xc, shift=THe - 1, axis=0))    # reads x[i+1, :]
        acc = x0m if has_sparse else None
        for kh in range(3):
            xr = rows[kh]
            cols = (pltpu.roll(xr, shift=1, axis=1),      # reads x[:, j-1]
                    xr,
                    pltpu.roll(xr, shift=W - 1, axis=1))  # reads x[:, j+1]
            for kw in range(3):
                term = cols[kw] * km[kh * 3 + kw]
                acc = term if acc is None else acc + term
        return acc

    xc = x0
    if prop_time <= 6:
        for _ in range(prop_time):
            xc = step(xc)
    else:
        xc = lax.fori_loop(0, prop_time, lambda i, v: step(v), xc, unroll=2)

    out_ref[...] = xc[halo:halo + TH, :].astype(out_ref.dtype)


def affinity_propagate3(guided, x, prop_time, sparse_depth=None, *, max_rows_per_tile=None):
    """Pallas implementation of AffinityPropagate3.forward (NCHW, K=3)."""
    B, C, H, W = guided.shape
    assert C == 9, "guided must have K^2 = 9 channels (3x3 kernel)"
    assert x.shape == (B, 1, H, W)
    has_sparse = sparse_depth is not None
    if has_sparse:
        assert sparse_depth.shape == (B, 1, H, W)
    prop_time = int(prop_time)

    gb = jnp.dtype(guided.dtype).itemsize
    xb = jnp.dtype(x.dtype).itemsize
    sb = jnp.dtype(sparse_depth.dtype).itemsize if has_sparse else 0
    ob = xb

    # ------------------- VMEM budget (generation aware) -------------------
    try:
        vmem_phys = int(pltpu.get_tpu_info().vmem_capacity_bytes)
    except Exception:
        vmem_phys = 64 * 1024 * 1024          # v7x lower bound; v5e/v6e have 128 MiB
    budget = vmem_phys // 2                   # headroom for Mosaic's own scratch

    TEMP_PLANES = 30                          # km(9) + softmax temps + loop-carried f32 values

    def vmem_need(th, hl):
        the = th + 2 * hl
        stream = 2 * th * W * (9 * gb + ob)               # double-buffered guided/out blocks
        scratch = the * W * (xb + sb) + 9 * 2 * hl * W * gb
        temps = TEMP_PLANES * the * W * 4
        return stream + scratch + temps

    # ------------------- choose H tiling (overlap halo) -------------------
    # Receptive field after prop_time 3x3 steps is prop_time rows per side;
    # round the halo to a multiple of 4 so the working buffer stays 8-aligned.
    halo_t = max(4, -(-prop_time // 4) * 4)
    cap = H if max_rows_per_tile is None else max(8, int(max_rows_per_tile))
    # v7x has 2 TensorCores: make sure there are >= 2 parallel grid steps.
    want_nt = 2 if (B == 1 and H >= 2 * (halo_t + 8)) else 1

    TH, halo, tiled = H, 0, False
    if H >= 2 * halo_t + 8:
        if vmem_need(H, 0) > budget or cap < H or want_nt > 1:
            th_min = max(8, -(-halo_t // 8) * 8)          # need TH >= halo for in-bounds DMA
            th = min(cap, -(-H // want_nt))
            th = max(th_min, (th // 8) * 8)
            while th - 8 >= th_min and vmem_need(th, halo_t) > budget:
                th -= 8
            if th < H:
                TH, halo, tiled = th, halo_t, True
    NT = -(-H // TH) if tiled else 1
    Hp = NT * TH

    guided_in, x_in, sparse_in = guided, x, sparse_depth
    if Hp != H:   # pad the bottom so blocked tiles divide H exactly (zeros are inert)
        pad = ((0, 0), (0, 0), (0, Hp - H), (0, 0))
        guided_in = jnp.pad(guided, pad)
        x_in = jnp.pad(x, pad)
        if has_sparse:
            sparse_in = jnp.pad(sparse_depth, pad)
    x_flat = x_in.reshape(B, Hp, W)
    sparse_flat = sparse_in.reshape(B, Hp, W) if has_sparse else None

    # ---------------------------- specs / call ----------------------------
    in_specs = [pl.BlockSpec((None, 9, TH, W), lambda bb, tt: (bb, 0, tt, 0))]   # guided tile
    args = [guided_in]
    if halo:
        in_specs.append(pl.BlockSpec(memory_space=pl.ANY))                       # guided (halo)
        args.append(guided_in)
    in_specs.append(pl.BlockSpec(memory_space=pl.ANY))                           # x
    args.append(x_flat)
    if has_sparse:
        in_specs.append(pl.BlockSpec(memory_space=pl.ANY))                       # sparse_depth
        args.append(sparse_flat)

    out_specs = pl.BlockSpec((None, None, TH, W), lambda bb, tt: (bb, 0, tt, 0))
    out_shape = jax.ShapeDtypeStruct((B, 1, Hp, W), x.dtype)

    THe = TH + 2 * halo
    scratch_shapes = [pltpu.VMEM((THe, W), x.dtype)]
    if has_sparse:
        scratch_shapes.append(pltpu.VMEM((THe, W), sparse_in.dtype))
    if halo:
        scratch_shapes.append(pltpu.VMEM((9, 2 * halo, W), guided.dtype))
    scratch_shapes.append(pltpu.SemaphoreType.DMA((8,)))

    vmem_limit = int(min(vmem_phys - (4 << 20),
                         max(2 * vmem_need(TH, halo), 32 << 20)))

    kernel = functools.partial(_prop_kernel, prop_time=prop_time,
                               has_sparse=has_sparse, halo=halo,
                               tile_h=TH, img_h=H)

    out = pl.pallas_call(
        kernel,
        out_shape=out_shape,
        grid=(B, NT),
        in_specs=in_specs,
        out_specs=out_specs,
        scratch_shapes=scratch_shapes,
        compiler_params=pltpu.CompilerParams(
            dimension_semantics=("parallel", "parallel"),   # batch & H-tiles independent
            vmem_limit_bytes=vmem_limit),
    )(*args)

    if Hp != H:
        out = out[:, :, :H, :]
    return out


def _reference(guided, x, prop_time, sparse_depth=None):
    """Pure-JAX reference mirroring the PyTorch forward."""
    B, C, H, W = guided.shape
    k = jax.nn.softmax(guided.astype(jnp.float32), axis=1)       # (B, 9, H, W)
    xi = x.astype(jnp.float32)
    if sparse_depth is not None:
        mask = jnp.sign(sparse_depth.astype(jnp.float32))
        x0 = xi
    for _ in range(prop_time):
        xp = jnp.pad(xi, ((0, 0), (0, 0), (1, 1), (1, 1)))
        patches = jnp.stack(
            [xp[:, 0, kh:kh + H, kw:kw + W] for kh in range(3) for kw in range(3)],
            axis=1)                                              # (B, 9, H, W)
        xi = jnp.sum(patches * k, axis=1, keepdims=True)
        if sparse_depth is not None:
            xi = mask * x0 + (1 - mask) * xi
    return xi.astype(x.dtype)


if __name__ == "__main__":
    B, H, W = 2, 16, 16
    prop_time = 3

    key = jax.random.PRNGKey(0)
    k1, k2, k3, k4 = jax.random.split(key, 4)
    guided = jax.random.normal(k1, (B, 9, H, W), dtype=jnp.float32)
    x = jax.random.normal(k2, (B, 1, H, W), dtype=jnp.float32)
    # sparse depth: ~10% valid pixels with positive depths
    valid = (jax.random.uniform(k3, (B, 1, H, W)) < 0.1).astype(jnp.float32)
    sparse_depth = valid * jax.random.uniform(k4, (B, 1, H, W), minval=0.5, maxval=5.0)

    # 1) no sparse depth (grid = (B, 1), batch on the grid)
    out1 = jax.block_until_ready(affinity_propagate3(guided, x, prop_time))
    ref1 = _reference(guided, x, prop_time)
    np.testing.assert_allclose(np.asarray(out1), np.asarray(ref1), rtol=2e-5, atol=2e-5)

    # 2) with sparse depth (mask/keep folded into the weights)
    out2 = jax.block_until_ready(
        affinity_propagate3(guided, x, prop_time, sparse_depth=sparse_depth))
    ref2 = _reference(guided, x, prop_time, sparse_depth=sparse_depth)
    np.testing.assert_allclose(np.asarray(out2), np.asarray(ref2), rtol=2e-5, atol=2e-5)

    # 3) exercise the H-tiled (overlap-halo) path used for large planes / v7x VMEM
    out3 = jax.block_until_ready(
        affinity_propagate3(guided, x, prop_time, sparse_depth=sparse_depth,
                            max_rows_per_tile=8))
    np.testing.assert_allclose(np.asarray(out3), np.asarray(ref2), rtol=2e-5, atol=2e-5)

    # 4) bf16 guided stream (halves the dominant HBM traffic on v6e/v7x);
    #    compare against a reference fed the same rounded weights.
    guided_bf16 = guided.astype(jnp.bfloat16)
    out4 = jax.block_until_ready(affinity_propagate3(guided_bf16, x, prop_time))
    ref4 = _reference(guided_bf16.astype(jnp.float32), x, prop_time)
    np.testing.assert_allclose(np.asarray(out4), np.asarray(ref4), rtol=2e-5, atol=2e-5)

    print("KERNEL_OK")
</pallas_src>

<mosaic_0001>
module attributes {stable_mosaic.version = 11 : i64} {
  func.func @_prop_kernel(%arg0: i32, %arg1: i32, %arg2: memref<1x9x16x16xf32, #tpu.memory_space<vmem>>, %arg3: memref<2x16x16xf32, #tpu.memory_space<any>>, %arg4: memref<1x1x16x16xf32, #tpu.memory_space<vmem>>, %arg5: memref<16x16xf32, #tpu.memory_space<vmem>>, %arg6: memref<8x!tpu.dma_semaphore, #tpu.memory_space<semaphore_mem>>) attributes {dimension_semantics = [#tpu.dimension_semantics<parallel>, #tpu.dimension_semantics<parallel>], iteration_bounds = array<i64: 2, 1>, scalar_prefetch = 0 : i64, scratch_operands = 2 : i64, tpu.core_type = #tpu.core_type<tc>, window_params = [{transform_indices = @transform_0, window_bounds = array<i64: 1, 9, 16, 16>}, {}, {transform_indices = @transform_2, window_bounds = array<i64: 1, 1, 16, 16>}]} {
    %c16_i32 = arith.constant 16 : i32
    %0 = arith.muli %arg1, %c16_i32 : i32
    %c0_i32 = arith.constant 0 : i32
    %c0_i32_0 = arith.constant 0 : i32
    %1 = tpu.memref_slice %arg3[%arg0, %0, %c0_i32_0] : memref<2x16x16xf32, #tpu.memory_space<any>> -> memref<1x16x16xf32, #tpu.memory_space<any>>
    %2 = tpu.memref_squeeze %1 : memref<1x16x16xf32, #tpu.memory_space<any>> -> memref<16x16xf32, #tpu.memory_space<any>>
    %c0_i32_1 = arith.constant 0 : i32
    %c0_i32_2 = arith.constant 0 : i32
    %3 = tpu.memref_slice %arg5[%c0_i32_1, %c0_i32_2] : memref<16x16xf32, #tpu.memory_space<vmem>> -> memref<16x16xf32, #tpu.memory_space<vmem>>
    %4 = tpu.memref_slice %arg6[%c0_i32] : memref<8x!tpu.dma_semaphore, #tpu.memory_space<semaphore_mem>> -> memref<1x!tpu.dma_semaphore, #tpu.memory_space<semaphore_mem>>
    %5 = tpu.memref_squeeze %4 : memref<1x!tpu.dma_semaphore, #tpu.memory_space<semaphore_mem>> -> memref<!tpu.dma_semaphore, #tpu.memory_space<semaphore_mem>>
    tpu.enqueue_dma source(%2 : memref<16x16xf32, #tpu.memory_space<any>>) target(%3 : memref<16x16xf32, #tpu.memory_space<vmem>>) target_semaphore(%5 : memref<!tpu.dma_semaphore, #tpu.memory_space<semaphore_mem>>)
    %c0_i32_3 = arith.constant 0 : i32
    %c0_i32_4 = arith.constant 0 : i32
    %6 = tpu.memref_slice %arg3[%arg0, %0, %c0_i32_4] : memref<2x16x16xf32, #tpu.memory_space<any>> -> memref<1x16x16xf32, #tpu.memory_space<any>>
    %7 = tpu.memref_squeeze %6 : memref<1x16x16xf32, #tpu.memory_space<any>> -> memref<16x16xf32, #tpu.memory_space<any>>
    %c0_i32_5 = arith.constant 0 : i32
    %c0_i32_6 = arith.constant 0 : i32
    %8 = tpu.memref_slice %arg5[%c0_i32_5, %c0_i32_6] : memref<16x16xf32, #tpu.memory_space<vmem>> -> memref<16x16xf32, #tpu.memory_space<vmem>>
    %9 = tpu.memref_slice %arg6[%c0_i32_3] : memref<8x!tpu.dma_semaphore, #tpu.memory_space<semaphore_mem>> -> memref<1x!tpu.dma_semaphore, #tpu.memory_space<semaphore_mem>>
    %10 = tpu.memref_squeeze %9 : memref<1x!tpu.dma_semaphore, #tpu.memory_space<semaphore_mem>> -> memref<!tpu.dma_semaphore, #tpu.memory_space<semaphore_mem>>
    tpu.wait_dma2 semaphore(%10 : memref<!tpu.dma_semaphore, #tpu.memory_space<semaphore_mem>>) src(%7 : memref<16x16xf32, #tpu.memory_space<any>>) dst(%8 : memref<16x16xf32, #tpu.memory_space<vmem>>)
    %11 = tpu.iota {dimensions = array<i32: 0>} : vector<16x16xi32>
    %c0_i32_7 = arith.constant 0 : i32
    %12 = arith.subi %0, %c0_i32_7 : i32
    %13 = vector.broadcast %12 : i32 to vector<16x16xi32>
    %14 = arith.addi %11, %13 : vector<16x16xi32>
    %15 = tpu.iota {dimensions = array<i32: 1>} : vector<16x16xi32>
    %c0_i32_8 = arith.constant 0 : i32
    %16 = vector.broadcast %c0_i32_8 : i32 to vector<16x16xi32>
    %17 = arith.cmpi sgt, %14, %16 : vector<16x16xi32>
    %c15_i32 = arith.constant 15 : i32
    %18 = vector.broadcast %c15_i32 : i32 to vector<16x16xi32>
    %19 = arith.cmpi slt, %14, %18 : vector<16x16xi32>
    %c0_i32_9 = arith.constant 0 : i32
    %20 = vector.broadcast %c0_i32_9 : i32 to vector<16x16xi32>
    %21 = arith.cmpi sgt, %15, %20 : vector<16x16xi32>
    %c15_i32_10 = arith.constant 15 : i32
    %22 = vector.broadcast %c15_i32_10 : i32 to vector<16x16xi32>
    %23 = arith.cmpi slt, %15, %22 : vector<16x16xi32>
    %c0 = arith.constant 0 : index
    %c0_11 = arith.constant 0 : index
    %c0_12 = arith.constant 0 : index
    %c0_13 = arith.constant 0 : index
    %24 = vector.load %arg2[%c0, %c0_11, %c0_12, %c0_13] : memref<1x9x16x16xf32, #tpu.memory_space<vmem>>, vector<1x9x16x16xf32>
    %25 = vector.shape_cast %24 : vector<1x9x16x16xf32> to vector<9x16x16xf32>
    %cst = arith.constant dense<0xFF800000> : vector<16x16xf32>
    %26 = vector.multi_reduction <maximumf>, %25, %cst [0] : vector<9x16x16xf32> to vector<16x16xf32>
    %27 = vector.shape_cast %26 : vector<16x16xf32> to vector<1x16x16xf32>
    %28 = vector.broadcast %27 : vector<1x16x16xf32> to vector<9x16x16xf32>
    %29 = arith.subf %25, %28 : vector<9x16x16xf32>
    %30 = math.exp %29 : vector<9x16x16xf32>
    %cst_14 = arith.constant dense<0.000000e+00> : vector<16x16xf32>
    %31 = vector.multi_reduction <add>, %30, %cst_14 [0] : vector<9x16x16xf32> to vector<16x16xf32>
    %32 = vector.shape_cast %31 : vector<16x16xf32> to vector<1x16x16xf32>
    %33 = tpu.reciprocal %32 {approx = true} : vector<1x16x16xf32> -> vector<1x16x16xf32>
    %34 = arith.mulf %32, %33 : vector<1x16x16xf32>
    %cst_15 = arith.constant 2.000000e+00 : f32
    %35 = vector.broadcast %cst_15 : f32 to vector<1x16x16xf32>
    %36 = arith.subf %35, %34 : vector<1x16x16xf32>
    %37 = arith.mulf %33, %36 : vector<1x16x16xf32>
    %38 = vector.broadcast %37 : vector<1x16x16xf32> to vector<9x16x16xf32>
    %39 = arith.mulf %30, %38 : vector<9x16x16xf32>
    %c0_16 = arith.constant 0 : index
    %c0_17 = arith.constant 0 : index
    %40 = vector.load %arg5[%c0_16, %c0_17] : memref<16x16xf32, #tpu.memory_space<vmem>>, vector<16x16xf32>
    %41 = vector.extract_strided_slice %39 {offsets = [0, 0, 0], sizes = [1, 16, 16], strides = [1, 1, 1]} : vector<9x16x16xf32> to vector<1x16x16xf32>
    %42 = vector.shape_cast %41 : vector<1x16x16xf32> to vector<16x16xf32>
    %43 = arith.andi %17, %21 : vector<16x16xi1>
    %cst_18 = arith.constant 0.000000e+00 : f32
    %44 = vector.broadcast %cst_18 : f32 to vector<16x16xf32>
    %45 = arith.select %43, %42, %44 : vector<16x16xi1>, vector<16x16xf32>
    %46 = vector.extract_strided_slice %39 {offsets = [1, 0, 0], sizes = [1, 16, 16], strides = [1, 1, 1]} : vector<9x16x16xf32> to vector<1x16x16xf32>
    %47 = vector.shape_cast %46 : vector<1x16x16xf32> to vector<16x16xf32>
    %cst_19 = arith.constant 0.000000e+00 : f32
    %48 = vector.broadcast %cst_19 : f32 to vector<16x16xf32>
    %49 = arith.select %17, %47, %48 : vector<16x16xi1>, vector<16x16xf32>
    %50 = vector.extract_strided_slice %39 {offsets = [2, 0, 0], sizes = [1, 16, 16], strides = [1, 1, 1]} : vector<9x16x16xf32> to vector<1x16x16xf32>
    %51 = vector.shape_cast %50 : vector<1x16x16xf32> to vector<16x16xf32>
    %52 = arith.andi %17, %23 : vector<16x16xi1>
    %cst_20 = arith.constant 0.000000e+00 : f32
    %53 = vector.broadcast %cst_20 : f32 to vector<16x16xf32>
    %54 = arith.select %52, %51, %53 : vector<16x16xi1>, vector<16x16xf32>
    %55 = vector.extract_strided_slice %39 {offsets = [3, 0, 0], sizes = [1, 16, 16], strides = [1, 1, 1]} : vector<9x16x16xf32> to vector<1x16x16xf32>
    %56 = vector.shape_cast %55 : vector<1x16x16xf32> to vector<16x16xf32>
    %cst_21 = arith.constant 0.000000e+00 : f32
    %57 = vector.broadcast %cst_21 : f32 to vector<16x16xf32>
    %58 = arith.select %21, %56, %57 : vector<16x16xi1>, vector<16x16xf32>
    %59 = vector.extract_strided_slice %39 {offsets = [4, 0, 0], sizes = [1, 16, 16], strides = [1, 1, 1]} : vector<9x16x16xf32> to vector<1x16x16xf32>
    %60 = vector.shape_cast %59 : vector<1x16x16xf32> to vector<16x16xf32>
    %61 = vector.extract_strided_slice %39 {offsets = [5, 0, 0], sizes = [1, 16, 16], strides = [1, 1, 1]} : vector<9x16x16xf32> to vector<1x16x16xf32>
    %62 = vector.shape_cast %61 : vector<1x16x16xf32> to vector<16x16xf32>
    %cst_22 = arith.constant 0.000000e+00 : f32
    %63 = vector.broadcast %cst_22 : f32 to vector<16x16xf32>
    %64 = arith.select %23, %62, %63 : vector<16x16xi1>, vector<16x16xf32>
    %65 = vector.extract_strided_slice %39 {offsets = [6, 0, 0], sizes = [1, 16, 16], strides = [1, 1, 1]} : vector<9x16x16xf32> to vector<1x16x16xf32>
    %66 = vector.shape_cast %65 : vector<1x16x16xf32> to vector<16x16xf32>
    %67 = arith.andi %19, %21 : vector<16x16xi1>
    %cst_23 = arith.constant 0.000000e+00 : f32
    %68 = vector.broadcast %cst_23 : f32 to vector<16x16xf32>
    %69 = arith.select %67, %66, %68 : vector<16x16xi1>, vector<16x16xf32>
    %70 = vector.extract_strided_slice %39 {offsets = [7, 0, 0], sizes = [1, 16, 16], strides = [1, 1, 1]} : vector<9x16x16xf32> to vector<1x16x16xf32>
    %71 = vector.shape_cast %70 : vector<1x16x16xf32> to vector<16x16xf32>
    %cst_24 = arith.constant 0.000000e+00 : f32
    %72 = vector.broadcast %cst_24 : f32 to vector<16x16xf32>
    %73 = arith.select %19, %71, %72 : vector<16x16xi1>, vector<16x16xf32>
    %74 = vector.extract_strided_slice %39 {offsets = [8, 0, 0], sizes = [1, 16, 16], strides = [1, 1, 1]} : vector<9x16x16xf32> to vector<1x16x16xf32>
    %75 = vector.shape_cast %74 : vector<1x16x16xf32> to vector<16x16xf32>
    %76 = arith.andi %19, %23 : vector<16x16xi1>
    %cst_25 = arith.constant 0.000000e+00 : f32
    %77 = vector.broadcast %cst_25 : f32 to vector<16x16xf32>
    %78 = arith.select %76, %75, %77 : vector<16x16xi1>, vector<16x16xf32>
    %c1_i32 = arith.constant 1 : i32
    %79 = tpu.dynamic_rotate %40 by %c1_i32 dim 0 : vector<16x16xf32>, i32 -> vector<16x16xf32>
    %c15_i32_26 = arith.constant 15 : i32
    %80 = tpu.dynamic_rotate %40 by %c15_i32_26 dim 0 : vector<16x16xf32>, i32 -> vector<16x16xf32>
    %c1_i32_27 = arith.constant 1 : i32
    %81 = tpu.dynamic_rotate %79 by %c1_i32_27 dim 1 : vector<16x16xf32>, i32 -> vector<16x16xf32>
    %c15_i32_28 = arith.constant 15 : i32
    %82 = tpu.dynamic_rotate %79 by %c15_i32_28 dim 1 : vector<16x16xf32>, i32 -> vector<16x16xf32>
    %83 = arith.mulf %81, %45 : vector<16x16xf32>
    %84 = arith.mulf %79, %49 : vector<16x16xf32>
    %85 = arith.addf %83, %84 : vector<16x16xf32>
    %86 = arith.mulf %82, %54 : vector<16x16xf32>
    %87 = arith.addf %85, %86 : vector<16x16xf32>
    %c1_i32_29 = arith.constant 1 : i32
    %88 = tpu.dynamic_rotate %40 by %c1_i32_29 dim 1 : vector<16x16xf32>, i32 -> vector<16x16xf32>
    %c15_i32_30 = arith.constant 15 : i32
    %89 = tpu.dynamic_rotate %40 by %c15_i32_30 dim 1 : vector<16x16xf32>, i32 -> vector<16x16xf32>
    %90 = arith.mulf %88, %58 : vector<16x16xf32>
    %91 = arith.addf %87, %90 : vector<16x16xf32>
    %92 = arith.mulf %40, %60 : vector<16x16xf32>
    %93 = arith.addf %91, %92 : vector<16x16xf32>
    %94 = arith.mulf %89, %64 : vector<16x16xf32>
    %95 = arith.addf %93, %94 : vector<16x16xf32>
    %c1_i32_31 = arith.constant 1 : i32
    %96 = tpu.dynamic_rotate %80 by %c1_i32_31 dim 1 : vector<16x16xf32>, i32 -> vector<16x16xf32>
    %c15_i32_32 = arith.constant 15 : i32
    %97 = tpu.dynamic_rotate %80 by %c15_i32_32 dim 1 : vector<16x16xf32>, i32 -> vector<16x16xf32>
    %98 = arith.mulf %96, %69 : vector<16x16xf32>
    %99 = arith.addf %95, %98 : vector<16x16xf32>
    %100 = arith.mulf %80, %73 : vector<16x16xf32>
    %101 = arith.addf %99, %100 : vector<16x16xf32>
    %102 = arith.mulf %97, %78 : vector<16x16xf32>
    %103 = arith.addf %101, %102 : vector<16x16xf32>
    %c1_i32_33 = arith.constant 1 : i32
    %104 = tpu.dynamic_rotate %103 by %c1_i32_33 dim 0 : vector<16x16xf32>, i32 -> vector<16x16xf32>
    %c15_i32_34 = arith.constant 15 : i32
    %105 = tpu.dynamic_rotate %103 by %c15_i32_34 dim 0 : vector<16x16xf32>, i32 -> vector<16x16xf32>
    %c1_i32_35 = arith.constant 1 : i32
    %106 = tpu.dynamic_rotate %104 by %c1_i32_35 dim 1 : vector<16x16xf32>, i32 -> vector<16x16xf32>
    %c15_i32_36 = arith.constant 15 : i32
    %107 = tpu.dynamic_rotate %104 by %c15_i32_36 dim 1 : vector<16x16xf32>, i32 -> vector<16x16xf32>
    %108 = arith.mulf %106, %45 : vector<16x16xf32>
    %109 = arith.mulf %104, %49 : vector<16x16xf32>
    %110 = arith.addf %108, %109 : vector<16x16xf32>
    %111 = arith.mulf %107, %54 : vector<16x16xf32>
    %112 = arith.addf %110, %111 : vector<16x16xf32>
    %c1_i32_37 = arith.constant 1 : i32
    %113 = tpu.dynamic_rotate %103 by %c1_i32_37 dim 1 : vector<16x16xf32>, i32 -> vector<16x16xf32>
    %c15_i32_38 = arith.constant 15 : i32
    %114 = tpu.dynamic_rotate %103 by %c15_i32_38 dim 1 : vector<16x16xf32>, i32 -> vector<16x16xf32>
    %115 = arith.mulf %113, %58 : vector<16x16xf32>
    %116 = arith.addf %112, %115 : vector<16x16xf32>
    %117 = arith.mulf %103, %60 : vector<16x16xf32>
    %118 = arith.addf %116, %117 : vector<16x16xf32>
    %119 = arith.mulf %114, %64 : vector<16x16xf32>
    %120 = arith.addf %118, %119 : vector<16x16xf32>
    %c1_i32_39 = arith.constant 1 : i32
    %121 = tpu.dynamic_rotate %105 by %c1_i32_39 dim 1 : vector<16x16xf32>, i32 -> vector<16x16xf32>
    %c15_i32_40 = arith.constant 15 : i32
    %122 = tpu.dynamic_rotate %105 by %c15_i32_40 dim 1 : vector<16x16xf32>, i32 -> vector<16x16xf32>
    %123 = arith.mulf %121, %69 : vector<16x16xf32>
    %124 = arith.addf %120, %123 : vector<16x16xf32>
    %125 = arith.mulf %105, %73 : vector<16x16xf32>
    %126 = arith.addf %124, %125 : vector<16x16xf32>
    %127 = arith.mulf %122, %78 : vector<16x16xf32>
    %128 = arith.addf %126, %127 : vector<16x16xf32>
    %c1_i32_41 = arith.constant 1 : i32
    %129 = tpu.dynamic_rotate %128 by %c1_i32_41 dim 0 : vector<16x16xf32>, i32 -> vector<16x16xf32>
    %c15_i32_42 = arith.constant 15 : i32
    %130 = tpu.dynamic_rotate %128 by %c15_i32_42 dim 0 : vector<16x16xf32>, i32 -> vector<16x16xf32>
    %c1_i32_43 = arith.constant 1 : i32
    %131 = tpu.dynamic_rotate %129 by %c1_i32_43 dim 1 : vector<16x16xf32>, i32 -> vector<16x16xf32>
    %c15_i32_44 = arith.constant 15 : i32
    %132 = tpu.dynamic_rotate %129 by %c15_i32_44 dim 1 : vector<16x16xf32>, i32 -> vector<16x16xf32>
    %133 = arith.mulf %131, %45 : vector<16x16xf32>
    %134 = arith.mulf %129, %49 : vector<16x16xf32>
    %135 = arith.addf %133, %134 : vector<16x16xf32>
    %136 = arith.mulf %132, %54 : vector<16x16xf32>
    %137 = arith.addf %135, %136 : vector<16x16xf32>
    %c1_i32_45 = arith.constant 1 : i32
    %138 = tpu.dynamic_rotate %128 by %c1_i32_45 dim 1 : vector<16x16xf32>, i32 -> vector<16x16xf32>
    %c15_i32_46 = arith.constant 15 : i32
    %139 = tpu.dynamic_rotate %128 by %c15_i32_46 dim 1 : vector<16x16xf32>, i32 -> vector<16x16xf32>
    %140 = arith.mulf %138, %58 : vector<16x16xf32>
    %141 = arith.addf %137, %140 : vector<16x16xf32>
    %142 = arith.mulf %128, %60 : vector<16x16xf32>
    %143 = arith.addf %141, %142 : vector<16x16xf32>
    %144 = arith.mulf %139, %64 : vector<16x16xf32>
    %145 = arith.addf %143, %144 : vector<16x16xf32>
    %c1_i32_47 = arith.constant 1 : i32
    %146 = tpu.dynamic_rotate %130 by %c1_i32_47 dim 1 : vector<16x16xf32>, i32 -> vector<16x16xf32>
    %c15_i32_48 = arith.constant 15 : i32
    %147 = tpu.dynamic_rotate %130 by %c15_i32_48 dim 1 : vector<16x16xf32>, i32 -> vector<16x16xf32>
    %148 = arith.mulf %146, %69 : vector<16x16xf32>
    %149 = arith.addf %145, %148 : vector<16x16xf32>
    %150 = arith.mulf %130, %73 : vector<16x16xf32>
    %151 = arith.addf %149, %150 : vector<16x16xf32>
    %152 = arith.mulf %147, %78 : vector<16x16xf32>
    %153 = arith.addf %151, %152 : vector<16x16xf32>
    %c0_49 = arith.constant 0 : index
    %c0_50 = arith.constant 0 : index
    %c0_51 = arith.constant 0 : index
    %c0_52 = arith.constant 0 : index
    %154 = vector.load %arg4[%c0_49, %c0_50, %c0_51, %c0_52] : memref<1x1x16x16xf32, #tpu.memory_space<vmem>>, vector<1x1x16x16xf32>
    %155 = vector.shape_cast %154 : vector<1x1x16x16xf32> to vector<16x16xf32>
    %156 = vector.shape_cast %153 : vector<16x16xf32> to vector<1x1x16x16xf32>
    tpu.vector_store %arg4[%c0_49, %c0_50, %c0_51, %c0_52], %156 {strides = array<i32>} : memref<1x1x16x16xf32, #tpu.memory_space<vmem>>, vector<1x1x16x16xf32>,
    return
  }
  func.func @transform_0(%arg0: i32, %arg1: i32) -> (i32, i32, i32, i32) {
    %c0_i32 = arith.constant 0 : i32
    %c0_i32_0 = arith.constant 0 : i32
    %c0_i32_1 = arith.constant 0 : i32
    return %arg0, %c0_i32, %arg1, %c0_i32_0 : i32, i32, i32, i32
  }
  func.func @transform_2(%arg0: i32, %arg1: i32) -> (i32, i32, i32, i32) {
    %c0_i32 = arith.constant 0 : i32
    %c0_i32_0 = arith.constant 0 : i32
    %c0_i32_1 = arith.constant 0 : i32
    return %arg0, %c0_i32, %arg1, %c0_i32_0 : i32, i32, i32, i32
  }
}

</mosaic_0001>

<bundles_post_ra>
// kernel: tpu_custom_call.1
= control target key start
LH: loop header
LB: loop body
LE: loop exit
PB: predicated region body
PF: predicated region fallthrough
CT: control target
= control target key end

     0   :  { %7 = vsyncpa [#allocation5], 0  ;;  %s2039_s0 = inlined_call_operand.hbm [shape: f32[2,9,16,16], index: 0, kind: input, shape index: {}]   ;;  %s2040_s1 = inlined_call_operand.hbm [shape: f32[2,16,16], index: 1, kind: input, shape index: {}]   ;;  %s2041_s2 = inlined_call_operand.hbm [shape: f32[2,1,16,16], index: 2, kind: output, shape index: {}]  }
   0x1   :  { %9 = vsyncpa [#allocation5 + $0x1], 0 }
   0x2   :  { %10 = vsyncpa [#allocation6], 0 }
   0x3   :  { %12 = vsyncpa [#allocation6 + $0x1], 0  ;;  %s1298_s9 = smov 0   ;;  %s1300_s10 = smov 0  }
   0x4   :  { %s1302_s11 = smov 0   ;;  %s1304_s12 = smov 0  }
   0x5   :  { %s1306_s13 = smov 0   ;;  %s1308_s14 = smov 0  }
   0x6 LB: > { %s992_s15 = sadd.s32 4294967295, %s1269_s14   ;;  %s993_s16 = sadd.s32 4294967294, %s1269_s14   ;;  %s1269_s14 = sphi %s1308_s14, %s18_s14   ;;  %s1265_s13 = sphi %s1306_s13, %s2056_s13   ;;  %s1261_s12 = sphi %s1304_s12, %s2055_s12   ;;  %s1257_s11 = sphi %s1302_s11, %s2054_s11   ;;  %s1253_s10 = sphi %s1300_s10, %s2053_s10   ;;  %s1249_s9 = sphi %s1298_s9, %s2052_s9  }
   0x7   : > { %s30_s17 = sadd.s32 1, %s1265_s13  ;;  %s39_s18 = sadd.s32 1, %s1257_s11 }
   0x8   : > { %p32_p0 = scmp.ge.s32.totalorder %s30_s17, 2  ;;  %p46_p1 = scmp.ne.s32.totalorder %s1257_s11, %s1253_s10 }
   0x9   : > { %p47_p2 = scmp.eq.s32.totalorder %s1269_s14, 0  ;;  %p52_p3 = scmp.ne.s32.totalorder %s1253_s10, %s1249_s9 }
   0xa   : > { %s2058_s17 = smov (%p32_p0, %s30_s17), 0  ;;  %p53_p5 = scmp.eq.s32.totalorder %s992_s15, 0 }
   0xb   : > { %p1339_p4 = por %p47_p2, %p46_p1  ;;  %s34_s20 = ssub.s32 %s1265_s13, %s2058_s17 }
   0xc   : > { %p78_p6 = scmp.eq.s32.totalorder %s992_s15, 1  ;;  %p37_p7 = scmp.eq.s32.totalorder %s34_s20, 0 }
   0xd   : > { %p1345_p8 = por %p53_p5, %p52_p3  ;;  %p84_p10 = scmp.eq.s32.totalorder %s993_s16, 1 }
   0xe   : > { %p1349_p9 = por %p78_p6, %p46_p1  ;;  %p1031_p13 = scmp.lt.s32.totalorder %s1269_s14, 2 }
   0xf   : > { %s1354_s23 = scalar_select %p37_p7, %s1257_s11, %s39_s18  }
  0x10   : > { %s2045_s22 = scalar_select %p1349_p9, 1, 0 }
  0x11   : > { %p1356_p11 = por %p84_p10, %p52_p3  ;;  %s104_s25 = sand.u32 1, %s1257_s11  }
  0x12   : > { %s1016_s26 = smul.u32 144, %s104_s25  ;;  %p1366_p0 = pnand %p1031_p13, %p1339_p4 }
  0x13   : > { %s2046_s24 = scalar_select %p1356_p11, 1, 0 }
  0x14   : > { %s1017_s27 = smul.u32 2304, %s1265_s13  ;;  %s108_s4 = scalar_lea.vmem [#allocation4], %s1016_s26 }
  0x15   : > { %s117_s5 = sshll.u32 %s108_s4, 4  ;;  %s1378_s6 = scalar_lea.sflag [#allocation5], %s104_s25  ;;  %s1375_s5 = int_to_ptr.vmem [resolvable:$true] %s117_s5 }
  0x16   : > { %s1373_s3 = scalar_lea.hbm %s2039_s0, %s1017_s27  ;;  %p1133_p3 = pneg %p1366_p0 }
  0x17   : > { %s1131_s7 = scalar_lea.hbm %s1373_s3, 2304  ;;  %s1136_s16 = scalar_lea.hbm %s2039_s0, 4608 }
  0x18   : > { %p1132_p2 = scmp.ne.s32.totalorder %s1373_s3, %s1131_s7  ;;  %p1137_p6 = scmp.lt.u32.totalorder %s1373_s3, %s2039_s0 }
  0x19   : > { %p1138_p7 = scmp.lt.u32.totalorder %s1136_s16, %s1131_s7  ;;  %p1140_p13 = scmp.lt.u32.totalorder %s1131_s7, %s1373_s3 }
  0x1a   : > { %p1134_p4 = pnand %p1133_p3, %p1132_p2 }
  0x1b   : > { %p1139_p10 = por %p1138_p7, %p1137_p6 }
  0x1c   : > { %p1135_p5 = pneg %p1134_p4 }
  0x1d   : > { %p1141_p12 = por %p1140_p13, %p1139_p10 }
  0x1f   : > { %p1142_p1 = pnand %p1141_p12, %p1135_p5 }
  0x21   : > { %1145 = shalt.err (!%p1142_p1)
}
  0x22   : > { %s1146_s20 = scalar_lea.vmem %s1375_s5, 2304  ;;  %s1271_s25 = smov [#allocation4]  }
  0x23   : > { %p1147_p2 = scmp.ne.s32.totalorder %s1375_s5, %s1146_s20  ;;  %s1151_s26 = sshll.u32 %s1271_s25, 4  ;;  %s1152_s26 = int_to_ptr.vmem [resolvable:$false] %s1151_s26 }
  0x24   : > { %s1153_s27 = scalar_lea.vmem %s1152_s26, 4608  ;;  %p1154_p9 = scmp.lt.s32.totalorder %s1375_s5, %s1152_s26 }
  0x25   : > { %p1149_p4 = pnand %p1147_p2, %p1133_p3  ;;  %p1155_p6 = scmp.lt.s32.totalorder %s1153_s27, %s1146_s20 }
  0x27   : > { %p1150_p11 = pneg %p1149_p4  ;;  %p1156_p7 = por %p1155_p6, %p1154_p9 }
  0x29   : > { %p1157_p10 = pnand %p1156_p7, %p1150_p11 }
  0x2b   : > { %1160 = shalt.err (!%p1157_p10)
}
  0x2c   : > { %s1272_s29 = smov 128   ;;  %s1273_s30 = smov 8  }
  0x2d   : > { %1026 = dma.hbm_to_vmem [thread:$0]  (!%p1366_p0), %s1373_s3, 2304, %s1375_s5, %s1378_s6, %s1272_s29, %s1272_s29, %s1273_s30  }
  0x2e   : > { %p125_p12 = scmp.lt.s32.totalorder %s1269_s14, 3  ;;  %p2048_p1 = scmp.ge.s32.totalorder %s1269_s14, 1 }
  0x30   : > { %p126_p3 = pnand %p2048_p1, %p125_p12 }
  0x31   : > { %s1410_s4 = sand.u32 (!%p126_p3), 1, %s1253_s10  }
  0x32   : > { %129 = sbr.rel (%p126_p3) target bundleno = 1558 (0x616), region = 24  ;;  %s132_s8 = scalar_lea.sflag (!%p126_p3), [#allocation5], %s1410_s4 }
  0x33   : > { %s1018_s7 = smul.u32 (!%p126_p3), 144, %s1410_s4 }
  0x35   : > { %s1414_s15 = scalar_lea.vmem (!%p126_p3), [#allocation4], %s1018_s7 }
  0x39   : > { %1238 = dma.done.wait (%p1345_p8), %s132_s8, 2304  }
  0x3a   : > { %1240 = vsyncadd (%p1345_p8), %s132_s8, 4294964992  ;;  %s998_s28 = sshll.u32 %s1410_s4, 4  ;;  %s1014_s3 = sshll.u32 %s1261_s12, 8 }
  0x3b   : > { %s160_s16 = scalar_lea.hbm %s2040_s1, %s1014_s3  ;;  %s1274_s18 = smov [#allocation2]  }
  0x3c   : > { %s168_s19 = sshll.u32 %s1274_s18, 4  ;;  %s1161_s20 = scalar_lea.hbm %s160_s16, 256  ;;  %s169_s19 = int_to_ptr.vmem [resolvable:$true] %s168_s19 }
  0x3d   : > { %p1162_p9 = scmp.ne.s32.totalorder %s160_s16, %s1161_s20  ;;  %s1163_s21 = scalar_lea.hbm %s2040_s1, 512 }
  0x3e   : > { %p1164_p8 = scmp.lt.u32.totalorder %s160_s16, %s2040_s1  ;;  %p1165_p11 = scmp.lt.u32.totalorder %s1163_s21, %s1161_s20 }
  0x3f   : > { %p1167_p5 = scmp.lt.u32.totalorder %s1161_s20, %s160_s16 }
  0x40   : > { %p1166_p0 = por %p1165_p11, %p1164_p8 }
  0x42   : > { %p1168_p13 = por %p1167_p5, %p1166_p0 }
  0x44   : > { %p1169_p2 = pnand %p1168_p13, %p1162_p9 }
  0x46   : > { %1172 = shalt.err (!%p1169_p2)  }
  0x47   : > { %s1173_s30 = scalar_lea.vmem %s169_s19, 256  ;;  %p1178_p6 = scmp.lt.s32.totalorder %s169_s19, %s169_s19 }
  0x48   : > { %p1174_p4 = scmp.ne.s32.totalorder %s169_s19, %s1173_s30  ;;  %p1179_p7 = scmp.lt.s32.totalorder %s1173_s30, %s1173_s30 }
  0x4a   : > { %p1180_p10 = por %p1179_p7, %p1178_p6 }
  0x4c   : > { %p1181_p12 = pnand %p1180_p10, %p1174_p4 }
  0x4e   : > { %1184 = shalt.err (!%p1181_p12)  }
  0x4f   : > { %171 = dma.hbm_to_vmem [thread:$0]  %s160_s16, 256, %s169_s19, [#allocation3] }
  0x50   : > { %s1433_s7 = scalar_lea.vmem [#allocation7], %s998_s28 }
  0x51   : > { %1241 = dma.done.wait [#allocation3], 256 }
  0x52   : > { %1242 = vsyncadd [#allocation3], 4294967040  ;;  %v175_v0 = vlaneseq  ;;  %vm207_vm0 = vcmask 130048   ;;  %v1438_v2 = vld [vmem:[#allocation2] sm:$0xff]  ;;  %v1440_v3 = vld [vmem:[#allocation2 + $0x8] sm:$0xff]  ;;  %s1275_s8 = smov 16   ;;  %s1984_s20 = scalar_lea.hbm %s2041_s2, %s1014_s3 }
  0x53   : > { %v1445_v4 = vld [vmem:[%s1414_s15] sm:$0xff]  ;;  %v382_v5 = vrot.slane %v1438_v2, 7  ;;  %v383_v6 = vrot.slane %v1440_v3, 7  ;;  %447 = vrot.lane.b32.xlu1 %v1438_v2, %s1275_s8  ;;  %v387_v7 = vrot.slane %v1438_v2, 1  ;;  %v388_v8 = vrot.slane %v1440_v3, 1  ;;  %v1454_v9 = vld [vmem:[%s1414_s15 + $0x10] sm:$0xff] }
  0x54   : > { %v1436_v1 = vshrl.u32 %v175_v0, 7  ;;  %v1457_v10 = vld [vmem:[%s1414_s15 + $0x20] sm:$0xff]  ;;  %v1460_v11 = vld [vmem:[%s1414_s15 + $0x30] sm:$0xff]  ;;  %v208_v14 = vsel %vm207_vm0, %v1445_v4, -inf  ;;  %v209_v15 = vsel %vm207_vm0, %v1454_v9, -inf  ;;  %v1504_v27 = vld [vmem:[%s1414_s15 + $0x8] sm:$0xff] }
  0x55   : > { %v1463_v12 = vld [vmem:[%s1414_s15 + $0x40] sm:$0xff]  ;;  %v1466_v13 = vld [vmem:[%s1414_s15 + $0x50] sm:$0xff]  ;;  %v210_v16 = vsel %vm207_vm0, %v1457_v10, -inf  ;;  %v212_v24 = vsel %vm207_vm0, %v1460_v11, -inf  ;;  %v1507_v28 = vld [vmem:[%s1414_s15 + $0x18] sm:$0xff]  ;;  %v225_v39 = vsel %vm207_vm0, %v1504_v27, -inf }
  0x56   : > { %vm384_vm1 = vcmp.lt.s32.totalorder %v1436_v1, 1  ;;  %vm389_vm2 = vcmp.lt.s32.totalorder %v1436_v1, 7  ;;  %v1487_v20 = vld [vmem:[%s1414_s15 + $0x60] sm:$0xff]  ;;  %v1490_v21 = vld [vmem:[%s1414_s15 + $0x70] sm:$0xff]  ;;  %v211_v23 = vmax.f32 %v208_v14, %v210_v16  ;;  %v214_v25 = vsel %vm207_vm0, %v1463_v12, -inf  ;;  %v1510_v29 = vld [vmem:[%s1414_s15 + $0x28] sm:$0xff] }
  0x57   : > { %v1476_v17 = vsel %vm384_vm1, %v383_v6, %v382_v5  ;;  %v1480_v18 = vsel %vm384_vm1, %v382_v5, %v383_v6  ;;  %v1484_v19 = vsel %vm389_vm2, %v388_v8, %v387_v7  ;;  %v1493_v22 = vld [vmem:[%s1414_s15 + $0x80] sm:$0xff]  ;;  %v216_v26 = vsel %vm207_vm0, %v1466_v13, -inf  ;;  %450 = vrot.lane.b32.xlu1 %v1440_v3, %s1275_s8  ;;  %v1521_v34 = vld [vmem:[%s1414_s15 + $0x38] sm:$0xff]  ;;  %v1524_v35 = vld [vmem:[%s1414_s15 + $0x48] sm:$0xff]  ;;  %s1277_s28 = smov 15   ;;  %s1278_s5 = smov 14  }
  0x58   : > { %393 = vrot.lane.b32.xlu0 %v1476_v17, %s1275_s8  ;;  %v213_v30 = vmax.f32 %v209_v15, %v212_v24  ;;  %v218_v31 = vsel %vm207_vm0, %v1487_v20, -inf  ;;  %v220_v32 = vsel %vm207_vm0, %v1490_v21, -inf  ;;  %v222_v33 = vsel %vm207_vm0, %v1493_v22, -inf  ;;  %v1527_v36 = vld [vmem:[%s1414_s15 + $0x58] sm:$0xff]  ;;  %v1530_v38 = vld [vmem:[%s1414_s15 + $0x68] sm:$0xff]  ;;  %s1279_s6 = smov 113  }
  0x59   : > { %v215_v37 = vmax.f32 %v211_v23, %v214_v25  ;;  %v226_v40 = vsel %vm207_vm0, %v1507_v28, -inf  ;;  %v227_v41 = vsel %vm207_vm0, %v1510_v29, -inf  ;;  %v1539_v43 = vld [vmem:[%s1414_s15 + $0x78] sm:$0xff]  ;;  %v1542_v44 = vld [vmem:[%s1414_s15 + $0x88] sm:$0xff]  ;;  %v229_v46 = vsel %vm207_vm0, %v1521_v34, -inf  ;;  %s1276_s15 = smov 1  }
  0x5a   : > { %v217_v42 = vmax.f32 %v213_v30, %v216_v26  ;;  %v228_v45 = vmax.f32 %v225_v39, %v227_v41  ;;  %v231_v47 = vsel %vm207_vm0, %v1524_v35, -inf  ;;  %v230_v49 = vmax.f32 %v226_v40, %v229_v46  ;;  %s845_s16 = sshll.u32 %s1433_s7, 4  ;;  %s830_s25 = scalar_lea.sflag [#allocation6], %s1410_s4  ;;  %s1986_s16 = int_to_ptr.vmem [resolvable:$true] %s845_s16 }
  0x5b   : > { %v219_v48 = vmax.f32 %v215_v37, %v218_v31  ;;  %v233_v50 = vsel %vm207_vm0, %v1527_v36, -inf  ;;  %v235_v51 = vsel %vm207_vm0, %v1530_v38, -inf  ;;  %v1556_v52 = vsel %vm389_vm2, %v387_v7, %v388_v8  ;;  %506 = vrot.lane.b32.xlu1 %v1484_v19, %s1275_s8  ;;  %s1185_s26 = scalar_lea.vmem %s1986_s16, 256  ;;  %p2049_p3 = scmp.ne.s32.totalorder %s2045_s22, 0 }
  0x5c   : > { %396 = vrot.lane.b32.xlu0 %v1480_v18, %s1275_s8  ;;  %v221_v53 = vmax.f32 %v217_v42, %v220_v32  ;;  %v232_v54 = vmax.f32 %v228_v45, %v231_v47  ;;  %v234_v56 = vmax.f32 %v230_v49, %v233_v50  ;;  %v237_v57 = vsel %vm207_vm0, %v1539_v43, -inf  ;;  %p1186_p1 = scmp.ne.s32.totalorder %s1986_s16, %s1185_s26  ;;  %s1280_s12 = smov [#allocation7]  }
  0x5d   : > { %v223_v55 = vmax.f32 %v219_v48, %v222_v33  ;;  %v239_v58 = vsel %vm207_vm0, %v1542_v44, -inf  ;;  %vm183_vm3 = vcmp.gt.s32.totalorder %v1436_v1, 0  ;;  %vm392_vm6 = vcmask 1047680   ;;  %s1189_s3 = sshll.u32 %s1280_s12, 4  ;;  %s1190_s3 = int_to_ptr.vmem [resolvable:$false] %s1189_s3 }
  0x5e   : > { %v236_v59 = vmax.f32 %v232_v54, %v235_v51  ;;  %v238_v61 = vmax.f32 %v234_v56, %v237_v57  ;;  %p1187_p9 = pnand %p1186_p1, %p2049_p3  ;;  %s1191_s21 = scalar_lea.vmem %s1190_s3, 512 }
  0x5f   : > { %v224_v60 = vmax.f32 %v223_v55, %v221_v53  ;;  %p1192_p11 = scmp.lt.s32.totalorder %s1986_s16, %s1190_s3  ;;  %p1193_p0 = scmp.lt.s32.totalorder %s1191_s21, %s1185_s26 }
  0x60   : > { %503 = vrot.lane.b32.xlu0 %v1556_v52, %s1275_s8  ;;  %v240_v62 = vmax.f32 %v236_v59, %v239_v58  ;;  %p1188_p8 = pneg %p1187_p9 }
  0x61   : > { %v242_v63 = vsub.f32 %v1445_v4, %v224_v60  ;;  %v244_v5 = vsub.f32 %v1454_v9, %v224_v60  ;;  %v246_v6 = vsub.f32 %v1457_v10, %v224_v60  ;;  %v248_v7 = vsub.f32 %v1460_v11, %v224_v60  ;;  %p1194_p5 = por %p1193_p0, %p1192_p11 }
  0x62   : > { %v250_v8 = vsub.f32 %v1463_v12, %v224_v60  ;;  %v252_v14 = vsub.f32 %v1466_v13, %v224_v60  ;;  %v254_v15 = vsub.f32 %v1487_v20, %v224_v60  ;;  %v256_v25 = vsub.f32 %v1490_v21, %v224_v60 }
  0x63   : > { %v260_v16 = vmul.f32 1.442695, %v242_v63  ;;  %v264_v23 = vmul.f32 1.442695, %v244_v5  ;;  %v268_v24 = vmul.f32 1.442695, %v246_v6  ;;  %v241_v30 = vmax.f32 %v240_v62, %v238_v61  ;;  %p1195_p13 = pnand %p1194_p5, %p1188_p8 }
  0x64   : > { %v272_v26 = vmul.f32 1.442695, %v248_v7  ;;  %v258_v4 = vsub.f32 %v1493_v22, %v224_v60  ;;  %v276_v9 = vmul.f32 1.442695, %v250_v8  ;;  %v280_v10 = vmul.f32 1.442695, %v252_v14 }
  0x65   : > { %1091 = vpow2.f32 %v260_v16  ;;  %v243_v11 = vsub.f32 %v1504_v27, %v241_v30  ;;  %v284_v12 = vmul.f32 1.442695, %v254_v15  ;;  %v245_v13 = vsub.f32 %v1507_v28, %v241_v30 }
  0x66   : > { %1093 = vpow2.f32 %v264_v23  ;;  %v288_v20 = vmul.f32 1.442695, %v256_v25  ;;  %v247_v31 = vsub.f32 %v1510_v29, %v241_v30  ;;  %v292_v21 = vmul.f32 1.442695, %v258_v4 }
  0x67   : > { %1095 = vpow2.f32 %v268_v24  ;;  %v249_v32 = vsub.f32 %v1521_v34, %v241_v30  ;;  %v251_v22 = vsub.f32 %v1524_v35, %v241_v30  ;;  %v262_v33 = vmul.f32 1.442695, %v243_v11 }
  0x68   : > { %1097 = vpow2.f32 %v272_v26  ;;  %v253_v37 = vsub.f32 %v1527_v36, %v241_v30  ;;  %v266_v27 = vmul.f32 1.442695, %v245_v13  ;;  %v270_v39 = vmul.f32 1.442695, %v247_v31 }
  0x69   : > { %1099 = vpow2.f32 %v276_v9  ;;  %v255_v28 = vsub.f32 %v1530_v38, %v241_v30  ;;  %v274_v40 = vmul.f32 1.442695, %v249_v32  ;;  %v278_v29 = vmul.f32 1.442695, %v251_v22 }
  0x6a   : > { %1101 = vpow2.f32 %v280_v10  ;;  %v257_v34 = vsub.f32 %v1539_v43, %v241_v30  ;;  %v282_v42 = vmul.f32 1.442695, %v253_v37  ;;  %v259_v46 = vsub.f32 %v1542_v44, %v241_v30 }
  0x6b   : > { %1103 = vpow2.f32 %v284_v12  ;;  %v286_v47 = vmul.f32 1.442695, %v255_v28 }
  0x6c   : > { %1105 = vpow2.f32 %v288_v20  ;;  %v290_v53 = vmul.f32 1.442695, %v257_v34  ;;  %v294_v57 = vmul.f32 1.442695, %v259_v46 }
  0x6d   : > { %1107 = vpow2.f32 %v292_v21 }
  0x6e   : > { %1109 = vpow2.f32 %v262_v33 }
  0x6f   : > { %v1582_v41 = vpop.eup %1091  ;;  %1111 = vpow2.f32 %v266_v27 }
  0x70   : > { %v1585_v35 = vpop.eup %1093  ;;  %v296_v36 = vsel %vm207_vm0, %v1582_v41, 0.0  ;;  %1113 = vpow2.f32 %v270_v39 }
  0x71   : > { %v1589_v45 = vpop.eup %1095  ;;  %v297_v38 = vsel %vm207_vm0, %v1585_v35, 0.0  ;;  %1115 = vpow2.f32 %v274_v40 }
  0x72   : > { %v1594_v48 = vpop.eup %1097  ;;  %v298_v43 = vadd.f32 %v297_v38, %v296_v36  ;;  %v299_v49 = vsel %vm207_vm0, %v1589_v45, 0.0  ;;  %1117 = vpow2.f32 %v278_v29  ;;  %v1636_v36 = vand.u32 127, %v175_v0 }
  0x73   : > { %v1598_v50 = vpop.eup %1099  ;;  %v301_v51 = vsel %vm207_vm0, %v1594_v48, 0.0  ;;  %1119 = vpow2.f32 %v282_v42 }
  0x74   : > { %v1602_v54 = vpop.eup %1101  ;;  %v300_v55 = vadd.f32 %v299_v49, %v298_v43  ;;  %v303_v56 = vsel %vm207_vm0, %v1598_v50, 0.0  ;;  %1121 = vpow2.f32 %v286_v47  ;;  %vm188_vm4 = vcmp.lt.s32.totalorder %v1636_v36, 15 }
  0x75   : > { %v1604_v44 = vpop.eup %1103  ;;  %v305_v61 = vsel %vm207_vm0, %v1602_v54, 0.0  ;;  %1123 = vpow2.f32 %v290_v53  ;;  %vm364_vm5 = vmand %vm183_vm3, %vm188_vm4  ;;  %vm187_vm7 = vcmp.gt.s32.totalorder %v1636_v36, 0 }
  0x76   : > { %v1608_v58 = vpop.eup %1105  ;;  %v302_v59 = vadd.f32 %v301_v51, %v300_v55  ;;  %v307_v6 = vsel %vm207_vm0, %v1604_v44, 0.0  ;;  %1125 = vpow2.f32 %v294_v57  ;;  %vm358_vm9 = vmand %vm183_vm3, %vm187_vm7 }
  0x77   : > { %v1108_v60 = vpop.eup %1107  ;;  %v309_v23 = vsel %vm207_vm0, %v1608_v58, 0.0 }
  0x78   : > { %v1110_v62 = vpop.eup %1109  ;;  %v304_v63 = vadd.f32 %v303_v56, %v302_v59  ;;  %v311_v10 = vsel %vm207_vm0, %v1108_v60, 0.0 }
  0x79   : > { %v1112_v5 = vpop.eup %1111  ;;  %v313_v7 = vsel %vm207_vm0, %v1110_v62, 0.0 }
  0x7a   : > { %v1114_v8 = vpop.eup %1113  ;;  %v306_v14 = vadd.f32 %v305_v61, %v304_v63  ;;  %v314_v15 = vsel %vm207_vm0, %v1112_v5, 0.0 }
  0x7b   : > { %v1116_v16 = vpop.eup %1115  ;;  %v315_v24 = vadd.f32 %v314_v15, %v313_v7  ;;  %v316_v25 = vsel %vm207_vm0, %v1114_v8, 0.0 }
  0x7c   : > { %v1619_v26 = vpop.eup %1117  ;;  %v308_v30 = vadd.f32 %v307_v6, %v306_v14  ;;  %v318_v4 = vsel %vm207_vm0, %v1116_v16, 0.0 }
  0x7d   : > { %v1120_v9 = vpop.eup %1119  ;;  %v317_v11 = vadd.f32 %v316_v25, %v315_v24  ;;  %v320_v13 = vsel %vm207_vm0, %v1619_v26, 0.0 }
  0x7e   : > { %v310_v12 = vadd.f32 %v309_v23, %v308_v30  ;;  %v1625_v20 = vpop.eup %1121  ;;  %v322_v32 = vsel %vm207_vm0, %v1120_v9, 0.0 }
  0x7f   : > { %v319_v31 = vadd.f32 %v318_v4, %v317_v11  ;;  %v1628_v22 = vpop.eup %1123  ;;  %v324_v37 = vsel %vm207_vm0, %v1625_v20, 0.0 }
  0x80   : > { %v312_v21 = vadd.f32 %v311_v10, %v310_v12  ;;  %v1126_v27 = vpop.eup %1125  ;;  %v326_v28 = vsel %vm207_vm0, %v1628_v22, 0.0 }
  0x81   : > { %v321_v33 = vadd.f32 %v320_v13, %v319_v31  ;;  %v328_v29 = vsel %vm207_vm0, %v1126_v27, 0.0 }
  0x82   : > { %1127 = vrcp.f32 %v312_v21 }
  0x83   : > { %v323_v39 = vadd.f32 %v322_v32, %v321_v33 }
  0x85   : > { %v325_v40 = vadd.f32 %v324_v37, %v323_v39 }
  0x87   : > { %v327_v34 = vadd.f32 %v326_v28, %v325_v40 }
  0x89   : > { %v329_v42 = vadd.f32 %v328_v29, %v327_v34 }
  0x8b   : > { %1129 = vrcp.f32 %v329_v42 }
  0x8c   : > { %v1128_v38 = vpop.eup %1127 }
  0x8d   : > { %v332_v46 = vmul.f32 %v1128_v38, %v312_v21 }
  0x8f   : > { %v334_v47 = vsub.f32 2.0, %v332_v46 }
  0x91   : > { %v1640_v43 = vmul.f32 %v1128_v38, %v334_v47 }
  0x93   : > { %v342_v49 = vmul.f32 %v1589_v45, %v1640_v43  ;;  %v354_v0 = vmul.f32 %v1108_v60, %v1640_v43  ;;  %v338_v51 = vmul.f32 %v1582_v41, %v1640_v43  ;;  %v340_v53 = vmul.f32 %v1585_v35, %v1640_v43 }
  0x94   : > { %v344_v55 = vmul.f32 %v1594_v48, %v1640_v43  ;;  %v1727_v39 = vmul.f32 %v1598_v50, %v1640_v43 }
  0x95   : > { %v1130_v56 = vpop.eup %1129  ;;  %v366_v57 = vsel %vm364_vm5, %v342_v49, 0.0  ;;  %v380_v13 = vsel %vm188_vm4, %v354_v0, 0.0  ;;  %v360_v21 = vsel %vm358_vm9, %v338_v51, 0.0  ;;  %v1713_v32 = vsel %vm183_vm3, %v340_v53, 0.0 }
  0x96   : > { %429 = vrot.lane.b32.xlu0 %v366_v57, %s1276_s15  ;;  %v333_v59 = vmul.f32 %v1130_v56, %v329_v42  ;;  %v415_v33 = vmul.f32 %v1476_v17, %v1713_v32  ;;  %v368_v28 = vsel %vm187_vm7, %v344_v55, 0.0  ;;  %v471_v40 = vmul.f32 %v1438_v2, %v1727_v39 }
  0x98   : > { %v335_v61 = vsub.f32 2.0, %v333_v59  ;;  %v350_v59 = vmul.f32 %v1604_v44, %v1640_v43 }
  0x9a   : > { %v1656_v63 = vmul.f32 %v1130_v56, %v335_v61 }
  0x9c   : > { %v343_v45 = vmul.f32 %v1114_v8, %v1656_v63  ;;  %v355_v60 = vmul.f32 %v1126_v27, %v1656_v63  ;;  %v339_v41 = vmul.f32 %v1110_v62, %v1656_v63  ;;  %v1662_v35 = vmul.f32 %v1112_v5, %v1656_v63 }
  0x9d   : > { %v345_v48 = vmul.f32 %v1116_v16, %v1656_v63  ;;  %v348_v5 = vmul.f32 %v1602_v54, %v1640_v43  ;;  %v349_v30 = vmul.f32 %v1120_v9, %v1656_v63  ;;  %v1685_v54 = vadd.s32 8, %v1436_v1 }
  0x9e   : > { %v367_v6 = vsel %vm188_vm4, %v343_v45, 0.0  ;;  %v361_v37 = vsel %vm187_vm7, %v339_v41, 0.0  ;;  %v416_v27 = vmul.f32 %v1480_v18, %v1662_v35  ;;  %v1737_v29 = vmul.f32 %v1619_v26, %v1656_v63 }
  0x9f   : > { %431 = vrot.lane.b32.xlu1 %v367_v6, %s1276_s15  ;;  %v370_v25 = vsel %vm188_vm4, %v348_v5, 0.0  ;;  %v371_v10 = vsel %vm188_vm4, %v349_v30, 0.0  ;;  %vm186_vm8 = vcmp.lt.s32.totalorder %v1685_v54, 15  ;;  %v369_v34 = vsel %vm187_vm7, %v345_v48, 0.0 }
  0xa0   : > { %vm379_vm10 = vmand %vm186_vm8, %vm188_vm4  ;;  %v472_v50 = vmul.f32 %v1440_v3, %v1737_v29  ;;  %v351_v44 = vmul.f32 %v1625_v20, %v1656_v63  ;;  %v353_v41 = vmul.f32 %v1628_v22, %v1656_v63 }
  0xa1   : > { %v381_v31 = vsel %vm379_vm10, %v355_v60, 0.0  ;;  %v374_v60 = vsel %vm187_vm7, %v350_v59, 0.0  ;;  %vm373_vm11 = vmand %vm186_vm8, %vm187_vm7 }
  0xa2   : > { %v1793_v22 = vsel %vm186_vm8, %v353_v41, 0.0 }
  0xa3   : > { %v528_v6 = vmul.f32 %v1484_v19, %v1793_v22 }
  0xc5   : > { %v448_v7 = vpop.permute.xlu1 %447 }
  0xc6   : > { %v449_v62 = vsel %vm392_vm6, %v448_v7, %v1438_v2 }
  0xc9   : > { %v451_v16 = vpop.permute.xlu1 %450 }
  0xca   : > { %v394_v14 = vpop.permute.xlu0 %393  ;;  %v452_v24 = vsel %vm392_vm6, %v451_v16, %v1440_v3 }
  0xcb   : > { %v395_v8 = vsel %vm392_vm6, %v394_v14, %v1476_v17 }
  0xcc   : > { %399 = vrot.lane.b32.xlu0 %v395_v8, %s1275_s8 }
  0xcd   : > { %v507_v12 = vpop.permute.xlu1 %506 }
  0xce   : > { %v397_v15 = vpop.permute.xlu0 %396  ;;  %v508_v9 = vsel %vm392_vm6, %v507_v12, %v1484_v19 }
  0xcf   : > { %v398_v23 = vsel %vm392_vm6, %v397_v15, %v1480_v18 }
  0xd0   : > { %401 = vrot.lane.b32.xlu1 %v398_v23, %s1275_s8  ;;  %453 = vrot.lane.b32.xlu0 %v449_v62, %s1275_s8 }
  0xd2   : > { %v504_v4 = vpop.permute.xlu0 %503 }
  0xd3   : > { %v505_v11 = vsel %vm392_vm6, %v504_v4, %v1556_v52 }
  0xd4   : > { %455 = vrot.lane.b32.xlu1 %v452_v24, %s1275_s8  ;;  %485 = vrot.lane.b32.xlu0 %v370_v25, %s1276_s15 }
  0xd8   : > { %487 = vrot.lane.b32.xlu1 %v371_v10, %s1276_s15  ;;  %509 = vrot.lane.b32.xlu0 %v505_v11, %s1275_s8 }
  0xdc   : > { %511 = vrot.lane.b32.xlu1 %v508_v9, %s1275_s8  ;;  %541 = vrot.lane.b32.xlu0 %v380_v13, %s1276_s15 }
  0xe0   : > { %543 = vrot.lane.b32.xlu1 %v381_v31, %s1276_s15  ;;  %407 = vrot.lane.b32.xlu0 %v360_v21, %s1277_s28 }
  0xe4   : > { %409 = vrot.lane.b32.xlu1 %v361_v37, %s1277_s28  ;;  %419 = vrot.lane.b32.xlu0 %v415_v33, %s1277_s28 }
  0xe8   : > { %421 = vrot.lane.b32.xlu1 %v416_v27, %s1277_s28  ;;  %461 = vrot.lane.b32.xlu0 %v368_v28, %s1277_s28 }
  0xec   : > { %463 = vrot.lane.b32.xlu1 %v369_v34, %s1277_s28  ;;  %475 = vrot.lane.b32.xlu0 %v471_v40, %s1277_s28 }
  0xf0   : > { %477 = vrot.lane.b32.xlu1 %v472_v50, %s1277_s28 }
 0x108   : > { %v1746_v42 = vpop.permute.xlu0 %429 }
 0x111   : > { %v1748_v38 = vpop.permute.xlu1 %431 }
 0x13e   : > { %v400_v46 = vpop.permute.xlu0 %399 }
 0x13f   : > { %v403_v55 = vsel %vm392_vm6, %v400_v46, %v1476_v17  ;;  %v1772_v17 = vmul.f32 %v1608_v58, %v1640_v43  ;;  %v375_v43 = vsel %vm373_vm11, %v351_v44, 0.0 }
 0x141   : > { %v527_v58 = vmul.f32 %v1556_v52, %v1772_v17 }
 0x142   : > { %v402_v47 = vpop.permute.xlu1 %401  ;;  %v454_v26 = vpop.permute.xlu0 %453 }
 0x143   : > { %v457_v49 = vsel %vm392_vm6, %v454_v26, %v1438_v2  ;;  %v435_v2 = vmul.f32 %v1746_v42, %v403_v55  ;;  %v404_v45 = vsel %vm392_vm6, %v402_v47, %v1480_v18 }
 0x144   : > { %v436_v18 = vmul.f32 %v1748_v38, %v404_v45 }
 0x146   : > { %v456_v0 = vpop.permute.xlu1 %455  ;;  %v1752_v51 = vpop.permute.xlu0 %485 }
 0x147   : > { %v491_v53 = vmul.f32 %v1752_v51, %v457_v49  ;;  %v458_v56 = vsel %vm392_vm6, %v456_v0, %v1440_v3 }
 0x149   : > { %495 = vrot.lane.b32.xlu0 %v491_v53, %s1278_s5 }
 0x14a   : > { %v1760_v57 = vpop.permute.xlu1 %487  ;;  %v510_v3 = vpop.permute.xlu0 %509 }
 0x14b   : > { %v492_v61 = vmul.f32 %v1760_v57, %v458_v56  ;;  %v513_v20 = vsel %vm392_vm6, %v510_v3, %v1556_v52 }
 0x14d   : > { %497 = vrot.lane.b32.xlu1 %v492_v61, %s1278_s5  ;;  %439 = vrot.lane.b32.xlu0 %v435_v2, %s1278_s5 }
 0x14e   : > { %v512_v63 = vpop.permute.xlu1 %511  ;;  %v1795_v36 = vpop.permute.xlu0 %541 }
 0x14f   : > { %v547_v48 = vmul.f32 %v1795_v36, %v513_v20  ;;  %v514_v52 = vsel %vm392_vm6, %v512_v63, %v1484_v19 }
 0x151   : > { %441 = vrot.lane.b32.xlu1 %v436_v18, %s1278_s5  ;;  %517 = vrot.lane.b32.xlu0 %v374_v60, %s1277_s28 }
 0x152   : > { %v1806_v7 = vpop.permute.xlu1 %543  ;;  %v1810_v8 = vpop.permute.xlu0 %407 }
 0x153   : > { %v548_v14 = vmul.f32 %v1806_v7, %v514_v52  ;;  %v413_v30 = vmul.f32 %v1810_v8, %v403_v55 }
 0x155   : > { %519 = vrot.lane.b32.xlu1 %v375_v43, %s1277_s28  ;;  %531 = vrot.lane.b32.xlu0 %v527_v58, %s1277_s28 }
 0x156   : > { %v1812_v62 = vpop.permute.xlu1 %409  ;;  %v420_v5 = vpop.permute.xlu0 %419 }
 0x157   : > { %v425_v4 = vadd.f32 %v420_v5, %v413_v30  ;;  %v414_v11 = vmul.f32 %v1812_v62, %v404_v45 }
 0x159   : > { %533 = vrot.lane.b32.xlu1 %v528_v6, %s1277_s28  ;;  %551 = vrot.lane.b32.xlu0 %v547_v48, %s1278_s5 }
 0x15a   : > { %v422_v15 = vpop.permute.xlu1 %421  ;;  %v1814_v16 = vpop.permute.xlu0 %461 }
 0x15b   : > { %v467_v12 = vmul.f32 %v1814_v16, %v457_v49  ;;  %v426_v13 = vadd.f32 %v422_v15, %v414_v11 }
 0x15d   : > { %553 = vrot.lane.b32.xlu1 %v548_v14, %s1278_s5 }
 0x15e   : > { %v1816_v23 = vpop.permute.xlu1 %463  ;;  %v476_v19 = vpop.permute.xlu0 %475 }
 0x15f   : > { %v468_v37 = vmul.f32 %v1816_v23, %v458_v56 }
 0x162   : > { %v478_v24 = vpop.permute.xlu1 %477 }
 0x1bb   : > { %v496_v25 = vpop.permute.xlu0 %495 }
 0x1bf   : > { %v498_v54 = vpop.permute.xlu1 %497  ;;  %v440_v10 = vpop.permute.xlu0 %439 }
 0x1c0   : > { %v445_v9 = vadd.f32 %v440_v10, %v425_v4 }
 0x1c2   : > { %v469_v31 = vadd.f32 %v467_v12, %v445_v9 }
 0x1c3   : > { %v442_v21 = vpop.permute.xlu1 %441  ;;  %v1821_v33 = vpop.permute.xlu0 %517 }
 0x1c4   : > { %v481_v27 = vadd.f32 %v476_v19, %v469_v31  ;;  %v446_v28 = vadd.f32 %v442_v21, %v426_v13  ;;  %v523_v34 = vmul.f32 %v1821_v33, %v513_v20 }
 0x1c6   : > { %v470_v40 = vadd.f32 %v468_v37, %v446_v28  ;;  %v501_v50 = vadd.f32 %v496_v25, %v481_v27 }
 0x1c7   : > { %v1825_v46 = vpop.permute.xlu1 %519  ;;  %v532_v47 = vpop.permute.xlu0 %531 }
 0x1c8   : > { %v482_v26 = vadd.f32 %v478_v24, %v470_v40  ;;  %v525_v0 = vadd.f32 %v523_v34, %v501_v50  ;;  %v524_v49 = vmul.f32 %v1825_v46, %v514_v52 }
 0x1ca   : > { %v537_v53 = vadd.f32 %v532_v47, %v525_v0  ;;  %v502_v55 = vadd.f32 %v498_v54, %v482_v26 }
 0x1cb   : > { %v534_v59 = vpop.permute.xlu1 %533  ;;  %v552_v2 = vpop.permute.xlu0 %551 }
 0x1cc   : > { %v526_v61 = vadd.f32 %v524_v49, %v502_v55  ;;  %v1828_v45 = vadd.f32 %v552_v2, %v537_v53 }
 0x1ce   : > { %v538_v56 = vadd.f32 %v534_v59, %v526_v61  ;;  %561 = vrot.lane.b32.xlu0 %v1828_v45, %s1279_s6 }
 0x1cf   : > { %v554_v3 = vpop.permute.xlu1 %553 }
 0x1d0   : > { %v1832_v60 = vadd.f32 %v554_v3, %v538_v56 }
 0x1d2   : > { %563 = vrot.lane.b32.xlu1 %v1832_v60, %s1279_s6 }
 0x240   : > { %v562_v44 = vpop.permute.xlu0 %561 }
 0x241   : > { %v567_v18 = vrot.slane %v562_v44, 7  ;;  %v571_v48 = vrot.slane %v562_v44, 1 }
 0x244   : > { %v564_v41 = vpop.permute.xlu1 %563 }
 0x245   : > { %v568_v58 = vrot.slane %v564_v41, 7  ;;  %v572_v63 = vrot.slane %v564_v41, 1 }
 0x247   : > { %v570_v20 = vsel %vm384_vm1, %v568_v58, %v567_v18  ;;  %v569_v43 = vsel %vm384_vm1, %v567_v18, %v568_v58  ;;  %v573_v6 = vsel %vm389_vm2, %v571_v48, %v572_v63  ;;  %v574_v52 = vsel %vm389_vm2, %v572_v63, %v571_v48 }
 0x248   : > { %575 = vrot.lane.b32.xlu0 %v570_v20, %s1275_s8  ;;  %578 = vrot.lane.b32.xlu1 %v569_v43, %s1275_s8  ;;  %v589_v9 = vmul.f32 %v570_v20, %v1713_v32  ;;  %v590_v13 = vmul.f32 %v569_v43, %v1662_v35  ;;  %v669_v53 = vmul.f32 %v573_v6, %v1772_v17 }
 0x249   : > { %v670_v55 = vmul.f32 %v574_v52, %v1793_v22 }
 0x24c   : > { %613 = vrot.lane.b32.xlu0 %v562_v44, %s1275_s8  ;;  %616 = vrot.lane.b32.xlu1 %v564_v41, %s1275_s8 }
 0x250   : > { %653 = vrot.lane.b32.xlu0 %v573_v6, %s1275_s8  ;;  %656 = vrot.lane.b32.xlu1 %v574_v52, %s1275_s8 }
 0x2ba   : > { %v576_v14 = vpop.permute.xlu0 %575  ;;  %v579_v5 = vpop.permute.xlu1 %578 }
 0x2bb   : > { %v577_v15 = vsel %vm392_vm6, %v576_v14, %v570_v20  ;;  %v580_v19 = vsel %vm392_vm6, %v579_v5, %v569_v43 }
 0x2bc   : > { %581 = vrot.lane.b32.xlu0 %v577_v15, %s1275_s8  ;;  %583 = vrot.lane.b32.xlu1 %v580_v19, %s1275_s8 }
 0x2be   : > { %v614_v24 = vpop.permute.xlu0 %613  ;;  %v617_v25 = vpop.permute.xlu1 %616 }
 0x2bf   : > { %v615_v30 = vsel %vm392_vm6, %v614_v24, %v562_v44  ;;  %v618_v4 = vsel %vm392_vm6, %v617_v25, %v564_v41 }
 0x2c0   : > { %619 = vrot.lane.b32.xlu0 %v615_v30, %s1275_s8  ;;  %621 = vrot.lane.b32.xlu1 %v618_v4, %s1275_s8 }
 0x2c2   : > { %v654_v54 = vpop.permute.xlu0 %653  ;;  %v657_v10 = vpop.permute.xlu1 %656 }
 0x2c3   : > { %v655_v11 = vsel %vm392_vm6, %v654_v54, %v573_v6  ;;  %v658_v12 = vsel %vm392_vm6, %v657_v10, %v574_v52 }
 0x2c4   : > { %659 = vrot.lane.b32.xlu0 %v655_v11, %s1275_s8  ;;  %661 = vrot.lane.b32.xlu1 %v658_v12, %s1275_s8 }
 0x2c8   : > { %593 = vrot.lane.b32.xlu0 %v589_v9, %s1277_s28  ;;  %595 = vrot.lane.b32.xlu1 %v590_v13, %s1277_s28 }
 0x2cc   : > { %631 = vrot.lane.b32.xlu0 %v1727_v39, %s1277_s28  ;;  %633 = vrot.lane.b32.xlu1 %v1737_v29, %s1277_s28 }
 0x32e   : > { %v582_v31 = vpop.permute.xlu0 %581  ;;  %v584_v21 = vpop.permute.xlu1 %583 }
 0x32f   : > { %v585_v37 = vsel %vm392_vm6, %v582_v31, %v570_v20  ;;  %v586_v27 = vsel %vm392_vm6, %v584_v21, %v569_v43 }
 0x330   : > { %v601_v28 = vmul.f32 %v585_v37, %v1746_v42  ;;  %v602_v40 = vmul.f32 %v586_v27, %v1748_v38  ;;  %v587_v58 = vmul.f32 %v585_v37, %v1810_v8  ;;  %v588_v20 = vmul.f32 %v586_v27, %v1812_v62 }
 0x332   : > { %v620_v34 = vpop.permute.xlu0 %619  ;;  %605 = vrot.lane.b32.xlu0 %v601_v28, %s1278_s5  ;;  %v622_v50 = vpop.permute.xlu1 %621  ;;  %607 = vrot.lane.b32.xlu1 %v602_v40, %s1278_s5 }
 0x333   : > { %v623_v39 = vsel %vm392_vm6, %v620_v34, %v562_v44  ;;  %v624_v29 = vsel %vm392_vm6, %v622_v50, %v564_v41 }
 0x334   : > { %v641_v47 = vmul.f32 %v623_v39, %v1752_v51  ;;  %v642_v26 = vmul.f32 %v624_v29, %v1760_v57  ;;  %v626_v14 = vmul.f32 %v624_v29, %v1816_v23 }
 0x336   : > { %v660_v0 = vpop.permute.xlu0 %659  ;;  %645 = vrot.lane.b32.xlu0 %v641_v47, %s1278_s5  ;;  %v662_v49 = vpop.permute.xlu1 %661  ;;  %647 = vrot.lane.b32.xlu1 %v642_v26, %s1278_s5 }
 0x337   : > { %v663_v59 = vsel %vm392_vm6, %v660_v0, %v573_v6  ;;  %v664_v2 = vsel %vm392_vm6, %v662_v49, %v574_v52  ;;  %v625_v52 = vmul.f32 %v623_v39, %v1814_v16 }
 0x338   : > { %v681_v61 = vmul.f32 %v663_v59, %v1795_v36  ;;  %v682_v56 = vmul.f32 %v664_v2, %v1806_v7  ;;  %v665_v12 = vmul.f32 %v663_v59, %v1821_v33  ;;  %v666_v9 = vmul.f32 %v664_v2, %v1825_v46 }
 0x33a   : > { %673 = vrot.lane.b32.xlu0 %v669_v53, %s1277_s28  ;;  %675 = vrot.lane.b32.xlu1 %v670_v55, %s1277_s28  ;;  %v594_v3 = vpop.permute.xlu0 %593  ;;  %v596_v44 = vpop.permute.xlu1 %595 }
 0x33b   : > { %v599_v43 = vadd.f32 %v594_v3, %v587_v58  ;;  %v600_v63 = vadd.f32 %v596_v44, %v588_v20 }
 0x33e   : > { %685 = vrot.lane.b32.xlu0 %v681_v61, %s1278_s5  ;;  %687 = vrot.lane.b32.xlu1 %v682_v56, %s1278_s5  ;;  %v1892_v41 = vpop.permute.xlu0 %631  ;;  %v1894_v18 = vpop.permute.xlu1 %633 }
 0x33f   : > { %v637_v19 = vmul.f32 %v1892_v41, %v1828_v45  ;;  %v638_v24 = vmul.f32 %v1894_v18, %v1832_v60 }
 0x3a4   : > { %v606_v48 = vpop.permute.xlu0 %605  ;;  %v608_v6 = vpop.permute.xlu1 %607 }
 0x3a5   : > { %v611_v5 = vadd.f32 %v606_v48, %v599_v43  ;;  %v612_v15 = vadd.f32 %v608_v6, %v600_v63 }
 0x3a7   : > { %v627_v25 = vadd.f32 %v625_v52, %v611_v5  ;;  %v628_v30 = vadd.f32 %v626_v14, %v612_v15 }
 0x3a8   : > { %v646_v4 = vpop.permute.xlu0 %645  ;;  %v648_v54 = vpop.permute.xlu1 %647 }
 0x3a9   : > { %v639_v10 = vadd.f32 %v637_v19, %v627_v25  ;;  %v640_v11 = vadd.f32 %v638_v24, %v628_v30 }
 0x3ab   : > { %v651_v13 = vadd.f32 %v646_v4, %v639_v10  ;;  %v652_v31 = vadd.f32 %v648_v54, %v640_v11 }
 0x3ac   : > { %v674_v21 = vpop.permute.xlu0 %673  ;;  %v676_v37 = vpop.permute.xlu1 %675 }
 0x3ad   : > { %v667_v27 = vadd.f32 %v665_v12, %v651_v13  ;;  %v668_v28 = vadd.f32 %v666_v9, %v652_v31 }
 0x3af   : > { %v679_v45 = vadd.f32 %v674_v21, %v667_v27  ;;  %v680_v40 = vadd.f32 %v676_v37, %v668_v28 }
 0x3b0   : > { %v686_v34 = vpop.permute.xlu0 %685  ;;  %v688_v60 = vpop.permute.xlu1 %687 }
 0x3b1   : > { %v1906_v50 = vadd.f32 %v686_v34, %v679_v45  ;;  %v1908_v39 = vadd.f32 %v688_v60, %v680_v40 }
 0x3b3   : > { %695 = vrot.lane.b32.xlu0 %v1906_v50, %s1279_s6  ;;  %697 = vrot.lane.b32.xlu1 %v1908_v39, %s1279_s6 }
 0x425   : > { %v696_v29 = vpop.permute.xlu0 %695  ;;  %v698_v47 = vpop.permute.xlu1 %697 }
 0x426   : > { %v701_v26 = vrot.slane %v696_v29, 7  ;;  %v702_v0 = vrot.slane %v698_v47, 7  ;;  %v705_v55 = vrot.slane %v696_v29, 1  ;;  %v706_v59 = vrot.slane %v698_v47, 1 }
 0x428   : > { %v704_v49 = vsel %vm384_vm1, %v702_v0, %v701_v26  ;;  %v703_v53 = vsel %vm384_vm1, %v701_v26, %v702_v0  ;;  %v707_v2 = vsel %vm389_vm2, %v705_v55, %v706_v59  ;;  %v708_v61 = vsel %vm389_vm2, %v706_v59, %v705_v55 }
 0x429   : > { %709 = vrot.lane.b32.xlu0 %v704_v49, %s1275_s8  ;;  %712 = vrot.lane.b32.xlu1 %v703_v53, %s1275_s8  ;;  %v723_v5 = vmul.f32 %v704_v49, %v1713_v32  ;;  %v724_v15 = vmul.f32 %v703_v53, %v1662_v35  ;;  %v796_v31 = vmul.f32 %v708_v61, %v1793_v22 }
 0x42a   : > { %v763_v26 = vmul.f32 %v1906_v50, %v1892_v41  ;;  %v764_v0 = vmul.f32 %v1908_v39, %v1894_v18 }
 0x42d   : > { %747 = vrot.lane.b32.xlu0 %v696_v29, %s1275_s8  ;;  %750 = vrot.lane.b32.xlu1 %v698_v47, %s1275_s8 }
 0x431   : > { %779 = vrot.lane.b32.xlu0 %v707_v2, %s1275_s8  ;;  %782 = vrot.lane.b32.xlu1 %v708_v61, %s1275_s8 }
 0x49b   : > { %v710_v56 = vpop.permute.xlu0 %709  ;;  %v713_v3 = vpop.permute.xlu1 %712 }
 0x49c   : > { %v711_v44 = vsel %vm392_vm6, %v710_v56, %v704_v49  ;;  %v714_v58 = vsel %vm392_vm6, %v713_v3, %v703_v53 }
 0x49d   : > { %715 = vrot.lane.b32.xlu0 %v711_v44, %s1275_s8  ;;  %717 = vrot.lane.b32.xlu1 %v714_v58, %s1275_s8 }
 0x49f   : > { %v748_v20 = vpop.permute.xlu0 %747  ;;  %v751_v43 = vpop.permute.xlu1 %750 }
 0x4a0   : > { %v749_v63 = vsel %vm392_vm6, %v748_v20, %v696_v29  ;;  %v752_v1 = vsel %vm392_vm6, %v751_v43, %v698_v47 }
 0x4a1   : > { %753 = vrot.lane.b32.xlu0 %v749_v63, %s1275_s8  ;;  %755 = vrot.lane.b32.xlu1 %v752_v1, %s1275_s8 }
 0x4a3   : > { %v780_v48 = vpop.permute.xlu0 %779  ;;  %v783_v6 = vpop.permute.xlu1 %782 }
 0x4a4   : > { %v781_v52 = vsel %vm392_vm6, %v780_v48, %v707_v2  ;;  %v784_v14 = vsel %vm392_vm6, %v783_v6, %v708_v61 }
 0x4a5   : > { %785 = vrot.lane.b32.xlu0 %v781_v52, %s1275_s8  ;;  %787 = vrot.lane.b32.xlu1 %v784_v14, %s1275_s8 }
 0x4a9   : > { %727 = vrot.lane.b32.xlu0 %v723_v5, %s1277_s28  ;;  %729 = vrot.lane.b32.xlu1 %v724_v15, %s1277_s28 }
 0x50f   : > { %v716_v19 = vpop.permute.xlu0 %715  ;;  %v718_v24 = vpop.permute.xlu1 %717 }
 0x510   : > { %v719_v25 = vsel %vm392_vm6, %v716_v19, %v704_v49  ;;  %v720_v30 = vsel %vm392_vm6, %v718_v24, %v703_v53 }
 0x511   : > { %v735_v4 = vmul.f32 %v719_v25, %v1746_v42  ;;  %v736_v54 = vmul.f32 %v720_v30, %v1748_v38  ;;  %v795_v38 = vmul.f32 %v707_v2, %v1772_v17  ;;  %v721_v22 = vmul.f32 %v719_v25, %v1810_v8 }
 0x512   : > { %v722_v28 = vmul.f32 %v720_v30, %v1812_v62 }
 0x513   : > { %v754_v10 = vpop.permute.xlu0 %753  ;;  %739 = vrot.lane.b32.xlu0 %v735_v4, %s1278_s5  ;;  %v756_v32 = vpop.permute.xlu1 %755  ;;  %741 = vrot.lane.b32.xlu1 %v736_v54, %s1278_s5 }
 0x514   : > { %v757_v35 = vsel %vm392_vm6, %v754_v10, %v696_v29  ;;  %v758_v11 = vsel %vm392_vm6, %v756_v32, %v698_v47 }
 0x515   : > { %v767_v12 = vmul.f32 %v757_v35, %v1752_v51  ;;  %v768_v9 = vmul.f32 %v758_v11, %v1760_v57  ;;  %v759_v29 = vmul.f32 %v757_v35, %v1814_v16 }
 0x517   : > { %v786_v13 = vpop.permute.xlu0 %785  ;;  %771 = vrot.lane.b32.xlu0 %v767_v12, %s1278_s5  ;;  %v788_v42 = vpop.permute.xlu1 %787  ;;  %773 = vrot.lane.b32.xlu1 %v768_v9, %s1278_s5 }
 0x518   : > { %v789_v21 = vsel %vm392_vm6, %v786_v13, %v707_v2  ;;  %v790_v37 = vsel %vm392_vm6, %v788_v42, %v708_v61 }
 0x519   : > { %v807_v51 = vmul.f32 %v789_v21, %v1795_v36  ;;  %v808_v57 = vmul.f32 %v790_v37, %v1806_v7  ;;  %v760_v36 = vmul.f32 %v758_v11, %v1816_v23  ;;  %v791_v2 = vmul.f32 %v789_v21, %v1821_v33 }
 0x51a   : > { %v792_v16 = vmul.f32 %v790_v37, %v1825_v46 }
 0x51b   : > { %799 = vrot.lane.b32.xlu0 %v795_v38, %s1277_s28  ;;  %801 = vrot.lane.b32.xlu1 %v796_v31, %s1277_s28  ;;  %v728_v27 = vpop.permute.xlu0 %727  ;;  %v730_v17 = vpop.permute.xlu1 %729 }
 0x51c   : > { %v733_v45 = vadd.f32 %v728_v27, %v721_v22  ;;  %v734_v40 = vadd.f32 %v730_v17, %v722_v28 }
 0x51f   : > { %811 = vrot.lane.b32.xlu0 %v807_v51, %s1278_s5  ;;  %813 = vrot.lane.b32.xlu1 %v808_v57, %s1278_s5 }
 0x585   : > { %v740_v34 = vpop.permute.xlu0 %739  ;;  %v742_v60 = vpop.permute.xlu1 %741 }
 0x586   : > { %v745_v47 = vadd.f32 %v740_v34, %v733_v45  ;;  %v746_v7 = vadd.f32 %v742_v60, %v734_v40 }
 0x588   : > { %v761_v49 = vadd.f32 %v759_v29, %v745_v47  ;;  %v762_v8 = vadd.f32 %v760_v36, %v746_v7 }
 0x589   : > { %v772_v53 = vpop.permute.xlu0 %771  ;;  %v774_v62 = vpop.permute.xlu1 %773 }
 0x58a   : > { %v765_v55 = vadd.f32 %v763_v26, %v761_v49  ;;  %v766_v59 = vadd.f32 %v764_v0, %v762_v8 }
 0x58c   : > { %v777_v23 = vadd.f32 %v772_v53, %v765_v55  ;;  %v778_v61 = vadd.f32 %v774_v62, %v766_v59 }
 0x58d   : > { %v800_v56 = vpop.permute.xlu0 %799  ;;  %v802_v3 = vpop.permute.xlu1 %801 }
 0x58e   : > { %v793_v41 = vadd.f32 %v791_v2, %v777_v23  ;;  %v794_v18 = vadd.f32 %v792_v16, %v778_v61 }
 0x590   : > { %v805_v50 = vadd.f32 %v800_v56, %v793_v41  ;;  %v806_v39 = vadd.f32 %v802_v3, %v794_v18 }
 0x591   : > { %v812_v44 = vpop.permute.xlu0 %811  ;;  %v814_v58 = vpop.permute.xlu1 %813 }
 0x592   : > { %v817_v20 = vadd.f32 %v812_v44, %v805_v50  ;;  %v818_v33 = vadd.f32 %v814_v58, %v806_v39 }
 0x594   : > { %821 = vrot.lane.b32.xlu0 %v817_v20, %s1279_s6  ;;  %823 = vrot.lane.b32.xlu1 %v818_v33, %s1279_s6 }
 0x606   : > { %v822_v46 = vpop.permute.xlu0 %821  ;;  %v824_v43 = vpop.permute.xlu1 %823 }
 0x607   : > { %827 = vst.msk [vmem:[%s1433_s7] sm:$0xff] %vm207_vm0, %v822_v46  ;;  %828 = vst.msk [vmem:[%s1433_s7 + $0x8] sm:$0xff] %vm207_vm0, %v824_v43 }
 0x608   : > { %1198 = shalt.err (!%p1195_p13)
}
 0x609   : > { %s1199_s27 = scalar_lea.hbm %s1984_s20, 256  ;;  %s1203_s7 = scalar_lea.hbm %s2041_s2, 512 }
 0x60a   : > { %p1200_p2 = scmp.ne.s32.totalorder %s1984_s20, %s1199_s27  ;;  %p1204_p7 = scmp.lt.u32.totalorder %s1984_s20, %s2041_s2 }
 0x60b   : > { %p1205_p10 = scmp.lt.u32.totalorder %s1203_s7, %s1199_s27  ;;  %p1207_p1 = scmp.lt.u32.totalorder %s1199_s27, %s1984_s20 }
 0x60c   : > { %p1201_p4 = pnand %p1200_p2, %p2049_p3 }
 0x60d   : > { %p1206_p12 = por %p1205_p10, %p1204_p7 }
 0x60e   : > { %p1202_p6 = pneg %p1201_p4 }
 0x60f   : > { %p1208_p9 = por %p1207_p1, %p1206_p12 }
 0x611   : > { %p1209_p8 = pnand %p1208_p9, %p1202_p6 }
 0x613   : > { %1212 = shalt.err (!%p1209_p8)
}
 0x614   : > { %s1281_s28 = smov 128   ;;  %s1282_s5 = smov 8  }
 0x615   : > { %1021 = dma.vmem_to_hbm [thread:$0]  (%p2049_p3), %s1986_s16, 256, %s1984_s20, %s830_s25, %s1281_s28, %s1281_s28, %s1282_s5  }
 0x616 PF: > { %s860_s6 = sand.u32 1, %s1249_s9   ;;  %p2050_p11 = scmp.ne.s32.totalorder %s2046_s24, 0 }
 0x617   : > { %p2051_p0 = scmp.ge.s32.totalorder %s1269_s14, 2  ;;  %s861_s18 = scalar_lea.sflag [#allocation6], %s860_s6 }
 0x619   : > { %p1028_p5 = pnand %p2051_p0, %p2050_p11 }
 0x61b   : > { %1244 = dma.done.wait (!%p1028_p5), %s861_s18, 256  }
 0x61c   : > { %1246 = vsyncadd (!%p1028_p5), %s861_s18, 4294967040  ;;  %s18_s14 = sadd.s32 1, %s1269_s14   ;;  %s2052_s9 = smov %s1253_s10 }
 0x61d   : > { %p15_p13 = scmp.ge.s32.totalorder %s18_s14, 4   ;;  %s2053_s10 = smov %s1257_s11 }
 0x61e   : > { %s2054_s11 = smov %s1354_s23  ;;  %s2055_s12 = smov %s1265_s13 }
 0x61f   : > { %s2056_s13 = smov %s2058_s17  ;;  %17 = sbr.rel (!%p15_p13) target bundleno = 6 (0x6), region = 81 }
 0x626   :  { %866 = vsyncpa [#allocation5], 1 }
 0x627   :  { %868 = vsyncpa [#allocation5 + $0x1], 1 }
 0x628   :  { %869 = vsyncpa [#allocation6], 1 }
 0x629   :  { %871 = vsyncpa [#allocation6 + $0x1], 1 }
 0x62a   :  { %872 = vsyncmov [#allocation3] }
 0x62d   :  { %s873_s22 = vpop.sfrf %872 }
 0x62e   :  { %p1006_p3 = scmp.ne.s32.totalorder %s873_s22, 0 }
 0x630   :  { %877 = shalt.err (%p1006_p3)  }
 0x631   :  { %879 = vsyncmov [#allocation3 + $0x1] }
 0x634   :  { %s880_s24 = vpop.sfrf %879 }
 0x635   :  { %p1007_p2 = scmp.ne.s32.totalorder %s880_s24, 0 }
 0x637   :  { %884 = shalt.err (%p1007_p2)  }
 0x638   :  { %886 = vsyncmov [#allocation3 + $0x2] }
 0x63b   :  { %s887_s23 = vpop.sfrf %886 }
 0x63c   :  { %p1008_p4 = scmp.ne.s32.totalorder %s887_s23, 0 }
 0x63e   :  { %891 = shalt.err (%p1008_p4)  }
 0x63f   :  { %893 = vsyncmov [#allocation3 + $0x3] }
 0x642   :  { %s894_s17 = vpop.sfrf %893 }
 0x643   :  { %p1009_p6 = scmp.ne.s32.totalorder %s894_s17, 0 }
 0x645   :  { %898 = shalt.err (%p1009_p6)  }
 0x646   :  { %900 = vsyncmov [#allocation3 + $0x4] }
 0x649   :  { %s901_s0 = vpop.sfrf %900 }
 0x64a   :  { %p1010_p7 = scmp.ne.s32.totalorder %s901_s0, 0 }
 0x64c   :  { %905 = shalt.err (%p1010_p7)  }
 0x64d   :  { %907 = vsyncmov [#allocation3 + $0x5] }
 0x650   :  { %s908_s1 = vpop.sfrf %907 }
 0x651   :  { %p1011_p10 = scmp.ne.s32.totalorder %s908_s1, 0 }
 0x653   :  { %912 = shalt.err (%p1011_p10)  }
 0x654   :  { %914 = vsyncmov [#allocation3 + $0x6] }
 0x657   :  { %s915_s2 = vpop.sfrf %914 }
 0x658   :  { %p1012_p12 = scmp.ne.s32.totalorder %s915_s2, 0 }
 0x65a   :  { %919 = shalt.err (%p1012_p12)  }
 0x65b   :  { %921 = vsyncmov [#allocation3 + $0x7] }
 0x65e   :  { %s922_s9 = vpop.sfrf %921 }
 0x65f   :  { %p1013_p1 = scmp.ne.s32.totalorder %s922_s9, 0 }
 0x661   :  { %926 = shalt.err (%p1013_p1)  }

</bundles_post_ra>
